<compile_context>
chip_gen: v6e
topology: v6e:2x2x1
jax: 0.10.0
libtpu: 0.0.40
codegen_flags: <defaults>
</compile_context>

<pallas_src>
import functools

import jax
import jax.numpy as jnp
from jax.experimental import pallas as pl
from jax.experimental.pallas import tpu as pltpu


# ------------------------------- fused kernel -------------------------------


def _tcn_fused_kernel(meta, x_ref, alphas_ref, wpack_ref, const_ref, o_ref,
                      stack_ref):
    """Whole TCN forward; channels on sublanes, (batch*time) on lanes.

    x_ref     : (c_in_pad, N) f32       input, channel rows >= c_in are zero
    alphas_ref: (14,) f32 in SMEM       PReLU slopes, 2 per block
    wpack_ref : (R, WK) bf16 in VMEM    ALL conv weights + fused bias columns
    const_ref : (out_pad + n_masks, N) f32  final-bias slab then shift masks
    o_ref     : (out_pad, N) f32
    stack_ref : (WK, N) bf16 scratch    persistent matmul rhs "stack":
                rows [0,C) tap-A slot, [C,2C) tap-B slot, row 2C = ones
                (drives the fused bias columns), rest always zero.
    """
    n = x_ref.shape[-1]
    C = meta["n_hidden"]
    ones_col = meta["ones_col"]          # == 2*C
    out_pad = meta["out_pad"]

    # One-time init of the rhs stack: zeros everywhere (also kills any stale
    # NaNs left in VMEM by earlier kernels), ones on the bias-driving row.
    row_idx = jax.lax.broadcasted_iota(jnp.int32, stack_ref.shape, 0)
    stack_ref[...] = (row_idx == ones_col).astype(stack_ref.dtype)

    def prelu(v, a):
        return jnp.where(v > 0.0, v, a * v)

    def shifted(v, off, mrow):
        """y[:, p] = v[:, p + off] within each length-L lane segment, else 0."""
        if off == 0:
            return v
        rolled = pltpu.roll(v, (-off) % n, axis=1)     # rolled[:, p] = v[:, (p+off) % n]
        return rolled * const_ref[mrow:mrow + 1, :]    # precomputed 0/1 mask row

    def put_slot(slot, v):
        """Write v's channels into rhs-stack slot (0 or 1), zero-padded to C rows
        so every store is a tile-aligned (C, N) bf16 store."""
        r = v.shape[0]
        if r < C:
            v = jnp.concatenate([v, jnp.zeros((C - r, n), v.dtype)], axis=0)
        stack_ref[slot * C:(slot + 1) * C, :] = v.astype(stack_ref.dtype)

    def mm(row0, rows):
        """One MXU push of a packed bf16 weight block against the resident stack;
        biases ride along via the ones row (f32 accumulation)."""
        return jnp.dot(wpack_ref[row0:row0 + rows, :], stack_ref[...],
                       preferred_element_type=jnp.float32)

    y = x_ref[...]                                     # residual chain stays f32

    for bi, blk in enumerate(meta["blocks"]):
        a1 = alphas_ref[2 * bi]
        a2 = alphas_ref[2 * bi + 1]
        kind = blk["kind"]
        if kind == "k1_ds":
            # conv1 (1x1) and the residual downsample share the same rhs ->
            # one fused MXU push with [w1; wd] stacked on the output rows.
            put_slot(0, y)
            r = mm(blk["w1_row"], 2 * C)               # [0,C)=conv1, [C,2C)=downsample
            h = prelu(r[0:C, :], a1)
            res = r[C:2 * C, :]
            put_slot(0, h)
            out = prelu(mm(blk["w2_row"], C), a2)
            y = out + res
        elif kind == "k1_id":
            put_slot(0, y)
            h = prelu(mm(blk["w1_row"], C), a1)
            put_slot(0, h)
            out = prelu(mm(blk["w2_row"], C), a2)
            y = out + y
        else:  # "k2_id": dilated k=2 conv, identity residual
            offa, ma = blk["tap_a"]
            offb, mb = blk["tap_b"]
            put_slot(0, shifted(y, offa, ma))
            put_slot(1, shifted(y, offb, mb))
            h = prelu(mm(blk["w1_row"], C), a1)
            put_slot(0, shifted(h, offa, ma))
            put_slot(1, shifted(h, offb, mb))
            out = prelu(mm(blk["w2_row"], C), a2)
            y = out + y

    # Final 1x1 conv.  Tap-B slot still holds block-6 data but the final
    # weight's columns there are zero, so it contributes nothing.  The final
    # bias is added exactly in f32 from the constants buffer.
    put_slot(0, y)
    o_ref[...] = mm(meta["wf_row"], out_pad) + const_ref[0:out_pad, :]


# ------------------------------ param packing --------------------------------


def _pack_tcn(params, B, L):
    """Host-side repack:
      * ONE bf16 (R, WK) buffer holding every conv weight with its bias as an
        extra column at `ones_col` (bias rides the MXU accumulation), laid out
        to match the kernel's resident rhs stack,
      * ONE small f32 constants buffer: pre-broadcast final bias slab + the
        shift mask for every unique dilation offset (no in-kernel iota / mod),
      * a flat PReLU-alpha vector for SMEM,
      * static `meta` (row offsets / tap offsets / mask rows) for the kernel."""
    n = B * L
    blocks = params["blocks"]
    C = params["wf"].shape[0]                       # n_hidden
    out_size = params["wf"].shape[1]
    c_in = blocks[0]["w1"].shape[1]
    c_in_pad = ((c_in + 7) // 8) * 8
    assert c_in_pad <= C, "input channels must fit in one rhs-stack slot"

    ones_col = 2 * C
    wk = ((2 * C + 1 + 127) // 128) * 128           # rhs-stack depth / weight lane width
    out_pad = ((out_size + 7) // 8) * 8

    masks, mask_row_of = [], {}

    def mask_row(off):
        if off == 0:
            return -1
        if off not in mask_row_of:
            t = jnp.arange(n, dtype=jnp.int32) % L
            m = jnp.logical_and(t + off >= 0, t + off < L).astype(jnp.float32)
            mask_row_of[off] = out_pad + len(masks)  # masks live after the bias slab
            masks.append(m)
        return mask_row_of[off]

    def conv_rows(taps, bias):
        """taps[j]: (C_in, C_out) == torch weight[:, :, j].T; bias: (1, C_out).
        Returns (C_out, wk): tap j at cols [j*C, j*C+C_in), bias at `ones_col`."""
        c_out = taps[0].shape[1]
        w = jnp.zeros((c_out, wk), jnp.float32)
        for j, tap in enumerate(taps):
            w = w.at[:, j * C:j * C + tap.shape[0]].set(tap.T)
        return w.at[:, ones_col].set(bias.reshape(-1))

    chunks, meta_blocks, alphas = [], [], []
    row = 0
    for blk in blocks:
        k, d = blk["k"], blk["dilation"]
        alphas += [blk["a1"].reshape(()), blk["a2"].reshape(())]
        if k == 1:
            if "wd" in blk:
                fused = jnp.concatenate(
                    [conv_rows([blk["w1"][0]], blk["b1"]),
                     conv_rows([blk["wd"]], blk["bd"])], axis=0)    # (2C, wk)
                meta_blocks.append({"kind": "k1_ds", "w1_row": row,
                                    "w2_row": row + 2 * C})
                chunks += [fused, conv_rows([blk["w2"][0]], blk["b2"])]
                row += 3 * C
            else:
                meta_blocks.append({"kind": "k1_id", "w1_row": row,
                                    "w2_row": row + C})
                chunks += [conv_rows([blk["w1"][0]], blk["b1"]),
                           conv_rows([blk["w2"][0]], blk["b2"])]
                row += 2 * C
        else:
            left = d // 2                 # torch/XLA 'same': extra zero pad on the right
            offa, offb = -left, d - left
            meta_blocks.append({"kind": "k2_id", "w1_row": row, "w2_row": row + C,
                                "tap_a": (offa, mask_row(offa)),
                                "tap_b": (offb, mask_row(offb))})
            chunks += [conv_rows([blk["w1"][0], blk["w1"][1]], blk["b1"]),
                       conv_rows([blk["w2"][0], blk["w2"][1]], blk["b2"])]
            row += 2 * C

    # Final 1x1 conv: no bias column (bias added exactly in f32 from const_ref).
    wf = jnp.zeros((out_pad, wk), jnp.float32)
    wf = wf.at[:out_size, 0:C].set(params["wf"].T)
    wf_row = row
    chunks.append(wf)
    row += out_pad

    wpack = jnp.concatenate(chunks, axis=0).astype(jnp.bfloat16)    # (R, wk)

    bias_slab = jnp.zeros((out_pad, n), jnp.float32)
    bias_slab = bias_slab.at[:out_size, :].set(
        jnp.broadcast_to(params["bf"].reshape(out_size, 1), (out_size, n)))
    const_parts = [bias_slab]
    if masks:
        const_parts.append(jnp.stack(masks, axis=0))
    consts = jnp.concatenate(const_parts, axis=0)                   # (out_pad+n_masks, n)

    meta = {"n_hidden": C, "ones_col": ones_col, "out_pad": out_pad,
            "c_in_pad": c_in_pad, "wk": wk, "wf_row": wf_row,
            "blocks": meta_blocks}
    return meta, jnp.stack(alphas), wpack, consts


# --------------------------------- forward -----------------------------------


def tcn_forward(x, params):
    """x: (B, L, input_size) float32 -> (B, L, output_size) float32."""
    B, L, c_in = x.shape
    n = B * L
    meta, alphas, wpack, consts = _pack_tcn(params, B, L)
    out_size = params["wf"].shape[1]

    # channels on sublanes, (batch*time) on lanes; time minor within each batch.
    xt = jnp.transpose(x.astype(jnp.float32), (2, 0, 1)).reshape(c_in, n)
    xt = jnp.pad(xt, ((0, meta["c_in_pad"] - c_in), (0, 0)))

    kernel = functools.partial(_tcn_fused_kernel, meta)
    vmem = pl.BlockSpec(memory_space=pltpu.MemorySpace.VMEM)
    smem = pl.BlockSpec(memory_space=pltpu.MemorySpace.SMEM)

    y = pl.pallas_call(
        kernel,
        out_shape=jax.ShapeDtypeStruct((meta["out_pad"], n), jnp.float32),
        in_specs=[vmem, smem, vmem, vmem],
        out_specs=vmem,
        scratch_shapes=[pltpu.VMEM((meta["wk"], n), jnp.bfloat16)],
    )(xt, alphas, wpack, consts)

    return jnp.transpose(y[:out_size].reshape(out_size, B, L), (1, 2, 0))


# ----------------------------- parameters / init -----------------------------


def init_tcn_params(key, input_size, output_size, n_hidden):
    """Deterministic synthetic init. Conv weights ~ N(0, 0.01) like the module."""
    params = {"blocks": []}
    dilation = 1
    for i in range(7):
        num_inputs = input_size if i == 0 else n_hidden
        kernel_size = 2 if i > 0 else 1
        dilation = 2 * dilation if i > 1 else 1
        key, k0, k1, k2, k3, k4, k5 = jax.random.split(key, 7)
        blk = {
            "k": kernel_size,
            "dilation": dilation,
            # weights stored as (k, C_in, C_out) == torch weight[:, :, j].T per tap
            "w1": 0.01 * jax.random.normal(k0, (kernel_size, num_inputs, n_hidden),
                                           jnp.float32),
            "b1": 0.02 * jax.random.normal(k1, (1, n_hidden), jnp.float32),
            "w2": 0.01 * jax.random.normal(k2, (kernel_size, n_hidden, n_hidden),
                                           jnp.float32),
            "b2": 0.02 * jax.random.normal(k3, (1, n_hidden), jnp.float32),
            "a1": jnp.full((1, 1), 0.25, jnp.float32),   # PReLU init
            "a2": jnp.full((1, 1), 0.25, jnp.float32),
        }
        if num_inputs != n_hidden:                       # downsample 1x1 conv
            blk["wd"] = 0.01 * jax.random.normal(k4, (num_inputs, n_hidden),
                                                 jnp.float32)
            blk["bd"] = 0.02 * jax.random.normal(k5, (1, n_hidden), jnp.float32)
        params["blocks"].append(blk)
    key, kf0, kf1 = jax.random.split(key, 3)
    params["wf"] = 0.01 * jax.random.normal(kf0, (n_hidden, output_size), jnp.float32)
    params["bf"] = 0.02 * jax.random.normal(kf1, (1, output_size), jnp.float32)
    return params


# ------------------------------ pure-JAX reference ---------------------------


def tcn_reference(x, params):
    y = jnp.transpose(x, (0, 2, 1))  # (B, C, L), mirrors torch transpose(1, 2)

    def dilated_conv(v, w, b, d):
        rhs = jnp.transpose(w, (2, 1, 0))  # (C_out, C_in, k)
        out = jax.lax.conv_general_dilated(
            v, rhs, window_strides=(1,), padding="SAME",
            rhs_dilation=(d,), dimension_numbers=("NCH", "OIH", "NCH"))
        return out + b.reshape(1, -1, 1)

    def prelu(v, a):
        return jnp.where(v > 0, v, a.reshape(()) * v)

    for blk in params["blocks"]:
        d = blk["dilation"]
        h = prelu(dilated_conv(y, blk["w1"], blk["b1"], d), blk["a1"])
        out = prelu(dilated_conv(h, blk["w2"], blk["b2"], d), blk["a2"])
        if "wd" in blk:
            res = jnp.einsum("bcl,co->bol", y, blk["wd"]) + blk["bd"].reshape(1, -1, 1)
        else:
            res = y
        y = out + res
    out = jnp.einsum("bcl,co->bol", y, params["wf"]) + params["bf"].reshape(1, -1, 1)
    return jnp.transpose(out, (0, 2, 1))


# ------------------------------------ main -----------------------------------

if __name__ == "__main__":
    B, L = 2, 64
    input_size, output_size, n_hidden = 4, 6, 32

    key = jax.random.PRNGKey(0)
    kx, kp = jax.random.split(key)
    x = jax.random.normal(kx, (B, L, input_size), jnp.float32)
    params = init_tcn_params(kp, input_size, output_size, n_hidden)

    y = tcn_forward(x, params)
    y = jax.block_until_ready(y)
    assert y.shape == (B, L, output_size), y.shape

    y_ref = tcn_reference(x, params)
    max_err = float(jnp.max(jnp.abs(y - y_ref)))
    # bf16 matmul operands (f32 accumulation); the pure-f32 path met 1e-4 and the
    # 0.01-scale weights keep the bf16 quantization error well below this bound.
    assert max_err < 2e-4, f"mismatch vs reference: max abs err {max_err}"

    print("KERNEL_OK")
</pallas_src>

<mosaic_0001>
module attributes {stable_mosaic.version = 11 : i64} {
  func.func @_tcn_fused_kernel(%arg0: memref<8x128xf32, #tpu.memory_space<vmem>>, %arg1: memref<14xf32, #tpu.memory_space<smem>>, %arg2: memref<488x128xbf16, #tpu.memory_space<vmem>>, %arg3: memref<18x128xf32, #tpu.memory_space<vmem>>, %arg4: memref<8x128xf32, #tpu.memory_space<vmem>>, %arg5: memref<128x128xbf16, #tpu.memory_space<vmem>>) attributes {dimension_semantics = [], scalar_prefetch = 0 : i64, scratch_operands = 1 : i64, tpu.core_type = #tpu.core_type<tc>} {
    %0 = tpu.iota {dimensions = array<i32: 0>} : vector<128x128xi32>
    %c64_i32 = arith.constant 64 : i32
    %1 = vector.broadcast %c64_i32 : i32 to vector<128x128xi32>
    %2 = arith.cmpi eq, %0, %1 : vector<128x128xi32>
    %3 = arith.extui %2 : vector<128x128xi1> to vector<128x128xi32>
    %4 = arith.sitofp %3 : vector<128x128xi32> to vector<128x128xf32>
    %5 = arith.truncf %4 : vector<128x128xf32> to vector<128x128xbf16>
    %c0 = arith.constant 0 : index
    %c0_0 = arith.constant 0 : index
    %6 = vector.load %arg5[%c0, %c0_0] : memref<128x128xbf16, #tpu.memory_space<vmem>>, vector<128x128xbf16>
    tpu.vector_store %arg5[%c0, %c0_0], %5 {strides = array<i32>} : memref<128x128xbf16, #tpu.memory_space<vmem>>, vector<128x128xbf16>,
    %c0_1 = arith.constant 0 : index
    %c0_2 = arith.constant 0 : index
    %7 = vector.load %arg0[%c0_1, %c0_2] : memref<8x128xf32, #tpu.memory_space<vmem>>, vector<8x128xf32>
    %c0_3 = arith.constant 0 : index
    %8 = memref.load %arg1[%c0_3] : memref<14xf32, #tpu.memory_space<smem>>
    %c1 = arith.constant 1 : index
    %9 = memref.load %arg1[%c1] : memref<14xf32, #tpu.memory_space<smem>>
    %cst = arith.constant 0.000000e+00 : f32
    %10 = vector.broadcast %cst : f32 to vector<24x128xf32>
    %11 = tpu.concatenate %7, %10 in 0 : vector<8x128xf32>, vector<24x128xf32> -> vector<32x128xf32>
    %12 = arith.truncf %11 : vector<32x128xf32> to vector<32x128xbf16>
    %c0_4 = arith.constant 0 : index
    %c0_5 = arith.constant 0 : index
    %13 = vector.load %arg5[%c0_4, %c0_5] : memref<128x128xbf16, #tpu.memory_space<vmem>>, vector<32x128xbf16>
    tpu.vector_store %arg5[%c0_4, %c0_5], %12 {strides = array<i32>} : memref<128x128xbf16, #tpu.memory_space<vmem>>, vector<32x128xbf16>,
    %c0_6 = arith.constant 0 : index
    %c0_7 = arith.constant 0 : index
    %14 = vector.load %arg2[%c0_6, %c0_7] : memref<488x128xbf16, #tpu.memory_space<vmem>>, vector<64x128xbf16>
    %c0_8 = arith.constant 0 : index
    %c0_9 = arith.constant 0 : index
    %15 = vector.load %arg5[%c0_8, %c0_9] : memref<128x128xbf16, #tpu.memory_space<vmem>>, vector<128x128xbf16>
    %cst_10 = arith.constant dense<0.000000e+00> : vector<64x128xf32>
    %16 = tpu.matmul %14, %15, %cst_10 {dimension_numbers = #tpu.dot_dimension_numbers<[1], [0], [0], [1], [0, 0, 1, 1], [], []>} : vector<64x128xbf16>, vector<128x128xbf16>, vector<64x128xf32> -> vector<64x128xf32>
    %17 = vector.extract_strided_slice %16 {offsets = [0, 0], sizes = [32, 128], strides = [1, 1]} : vector<64x128xf32> to vector<32x128xf32>
    %cst_11 = arith.constant 0.000000e+00 : f32
    %18 = vector.broadcast %cst_11 : f32 to vector<32x128xf32>
    %19 = arith.cmpf ogt, %17, %18 : vector<32x128xf32>
    %20 = vector.broadcast %8 : f32 to vector<32x128xf32>
    %21 = arith.mulf %20, %17 : vector<32x128xf32>
    %22 = arith.select %19, %17, %21 : vector<32x128xi1>, vector<32x128xf32>
    %23 = vector.extract_strided_slice %16 {offsets = [32, 0], sizes = [32, 128], strides = [1, 1]} : vector<64x128xf32> to vector<32x128xf32>
    %24 = arith.truncf %22 : vector<32x128xf32> to vector<32x128xbf16>
    %c0_12 = arith.constant 0 : index
    %c0_13 = arith.constant 0 : index
    %25 = vector.load %arg5[%c0_12, %c0_13] : memref<128x128xbf16, #tpu.memory_space<vmem>>, vector<32x128xbf16>
    tpu.vector_store %arg5[%c0_12, %c0_13], %24 {strides = array<i32>} : memref<128x128xbf16, #tpu.memory_space<vmem>>, vector<32x128xbf16>,
    %c64 = arith.constant 64 : index
    %c0_14 = arith.constant 0 : index
    %26 = vector.load %arg2[%c64, %c0_14] : memref<488x128xbf16, #tpu.memory_space<vmem>>, vector<32x128xbf16>
    %c0_15 = arith.constant 0 : index
    %c0_16 = arith.constant 0 : index
    %27 = vector.load %arg5[%c0_15, %c0_16] : memref<128x128xbf16, #tpu.memory_space<vmem>>, vector<128x128xbf16>
    %cst_17 = arith.constant dense<0.000000e+00> : vector<32x128xf32>
    %28 = tpu.matmul %26, %27, %cst_17 {dimension_numbers = #tpu.dot_dimension_numbers<[1], [0], [0], [1], [0, 0, 1, 1], [], []>} : vector<32x128xbf16>, vector<128x128xbf16>, vector<32x128xf32> -> vector<32x128xf32>
    %cst_18 = arith.constant 0.000000e+00 : f32
    %29 = vector.broadcast %cst_18 : f32 to vector<32x128xf32>
    %30 = arith.cmpf ogt, %28, %29 : vector<32x128xf32>
    %31 = vector.broadcast %9 : f32 to vector<32x128xf32>
    %32 = arith.mulf %31, %28 : vector<32x128xf32>
    %33 = arith.select %30, %28, %32 : vector<32x128xi1>, vector<32x128xf32>
    %34 = arith.addf %33, %23 : vector<32x128xf32>
    %c2 = arith.constant 2 : index
    %35 = memref.load %arg1[%c2] : memref<14xf32, #tpu.memory_space<smem>>
    %c3 = arith.constant 3 : index
    %36 = memref.load %arg1[%c3] : memref<14xf32, #tpu.memory_space<smem>>
    %37 = arith.truncf %34 : vector<32x128xf32> to vector<32x128xbf16>
    %c0_19 = arith.constant 0 : index
    %c0_20 = arith.constant 0 : index
    %38 = vector.load %arg5[%c0_19, %c0_20] : memref<128x128xbf16, #tpu.memory_space<vmem>>, vector<32x128xbf16>
    tpu.vector_store %arg5[%c0_19, %c0_20], %37 {strides = array<i32>} : memref<128x128xbf16, #tpu.memory_space<vmem>>, vector<32x128xbf16>,
    %c127_i32 = arith.constant 127 : i32
    %39 = tpu.dynamic_rotate %34 by %c127_i32 dim 1 : vector<32x128xf32>, i32 -> vector<32x128xf32>
    %c8 = arith.constant 8 : index
    %c0_21 = arith.constant 0 : index
    %40 = vector.load %arg3[%c8, %c0_21] : memref<18x128xf32, #tpu.memory_space<vmem>>, vector<1x128xf32>
    %41 = vector.broadcast %40 : vector<1x128xf32> to vector<32x128xf32>
    %42 = arith.mulf %39, %41 : vector<32x128xf32>
    %43 = arith.truncf %42 : vector<32x128xf32> to vector<32x128xbf16>
    %c32 = arith.constant 32 : index
    %c0_22 = arith.constant 0 : index
    %44 = vector.load %arg5[%c32, %c0_22] : memref<128x128xbf16, #tpu.memory_space<vmem>>, vector<32x128xbf16>
    tpu.vector_store %arg5[%c32, %c0_22], %43 {strides = array<i32>} : memref<128x128xbf16, #tpu.memory_space<vmem>>, vector<32x128xbf16>,
    %c96 = arith.constant 96 : index
    %c0_23 = arith.constant 0 : index
    %45 = vector.load %arg2[%c96, %c0_23] : memref<488x128xbf16, #tpu.memory_space<vmem>>, vector<32x128xbf16>
    %c0_24 = arith.constant 0 : index
    %c0_25 = arith.constant 0 : index
    %46 = vector.load %arg5[%c0_24, %c0_25] : memref<128x128xbf16, #tpu.memory_space<vmem>>, vector<128x128xbf16>
    %cst_26 = arith.constant dense<0.000000e+00> : vector<32x128xf32>
    %47 = tpu.matmul %45, %46, %cst_26 {dimension_numbers = #tpu.dot_dimension_numbers<[1], [0], [0], [1], [0, 0, 1, 1], [], []>} : vector<32x128xbf16>, vector<128x128xbf16>, vector<32x128xf32> -> vector<32x128xf32>
    %cst_27 = arith.constant 0.000000e+00 : f32
    %48 = vector.broadcast %cst_27 : f32 to vector<32x128xf32>
    %49 = arith.cmpf ogt, %47, %48 : vector<32x128xf32>
    %50 = vector.broadcast %35 : f32 to vector<32x128xf32>
    %51 = arith.mulf %50, %47 : vector<32x128xf32>
    %52 = arith.select %49, %47, %51 : vector<32x128xi1>, vector<32x128xf32>
    %53 = arith.truncf %52 : vector<32x128xf32> to vector<32x128xbf16>
    %c0_28 = arith.constant 0 : index
    %c0_29 = arith.constant 0 : index
    %54 = vector.load %arg5[%c0_28, %c0_29] : memref<128x128xbf16, #tpu.memory_space<vmem>>, vector<32x128xbf16>
    tpu.vector_store %arg5[%c0_28, %c0_29], %53 {strides = array<i32>} : memref<128x128xbf16, #tpu.memory_space<vmem>>, vector<32x128xbf16>,
    %c127_i32_30 = arith.constant 127 : i32
    %55 = tpu.dynamic_rotate %52 by %c127_i32_30 dim 1 : vector<32x128xf32>, i32 -> vector<32x128xf32>
    %c8_31 = arith.constant 8 : index
    %c0_32 = arith.constant 0 : index
    %56 = vector.load %arg3[%c8_31, %c0_32] : memref<18x128xf32, #tpu.memory_space<vmem>>, vector<1x128xf32>
    %57 = vector.broadcast %56 : vector<1x128xf32> to vector<32x128xf32>
    %58 = arith.mulf %55, %57 : vector<32x128xf32>
    %59 = arith.truncf %58 : vector<32x128xf32> to vector<32x128xbf16>
    %c32_33 = arith.constant 32 : index
    %c0_34 = arith.constant 0 : index
    %60 = vector.load %arg5[%c32_33, %c0_34] : memref<128x128xbf16, #tpu.memory_space<vmem>>, vector<32x128xbf16>
    tpu.vector_store %arg5[%c32_33, %c0_34], %59 {strides = array<i32>} : memref<128x128xbf16, #tpu.memory_space<vmem>>, vector<32x128xbf16>,
    %c128 = arith.constant 128 : index
    %c0_35 = arith.constant 0 : index
    %61 = vector.load %arg2[%c128, %c0_35] : memref<488x128xbf16, #tpu.memory_space<vmem>>, vector<32x128xbf16>
    %c0_36 = arith.constant 0 : index
    %c0_37 = arith.constant 0 : index
    %62 = vector.load %arg5[%c0_36, %c0_37] : memref<128x128xbf16, #tpu.memory_space<vmem>>, vector<128x128xbf16>
    %cst_38 = arith.constant dense<0.000000e+00> : vector<32x128xf32>
    %63 = tpu.matmul %61, %62, %cst_38 {dimension_numbers = #tpu.dot_dimension_numbers<[1], [0], [0], [1], [0, 0, 1, 1], [], []>} : vector<32x128xbf16>, vector<128x128xbf16>, vector<32x128xf32> -> vector<32x128xf32>
    %cst_39 = arith.constant 0.000000e+00 : f32
    %64 = vector.broadcast %cst_39 : f32 to vector<32x128xf32>
    %65 = arith.cmpf ogt, %63, %64 : vector<32x128xf32>
    %66 = vector.broadcast %36 : f32 to vector<32x128xf32>
    %67 = arith.mulf %66, %63 : vector<32x128xf32>
    %68 = arith.select %65, %63, %67 : vector<32x128xi1>, vector<32x128xf32>
    %69 = arith.addf %68, %34 : vector<32x128xf32>
    %c4 = arith.constant 4 : index
    %70 = memref.load %arg1[%c4] : memref<14xf32, #tpu.memory_space<smem>>
    %c5 = arith.constant 5 : index
    %71 = memref.load %arg1[%c5] : memref<14xf32, #tpu.memory_space<smem>>
    %c1_i32 = arith.constant 1 : i32
    %72 = tpu.dynamic_rotate %69 by %c1_i32 dim 1 : vector<32x128xf32>, i32 -> vector<32x128xf32>
    %c9 = arith.constant 9 : index
    %c0_40 = arith.constant 0 : index
    %73 = vector.load %arg3[%c9, %c0_40] : memref<18x128xf32, #tpu.memory_space<vmem>>, vector<1x128xf32>
    %74 = vector.broadcast %73 : vector<1x128xf32> to vector<32x128xf32>
    %75 = arith.mulf %72, %74 : vector<32x128xf32>
    %76 = arith.truncf %75 : vector<32x128xf32> to vector<32x128xbf16>
    %c0_41 = arith.constant 0 : index
    %c0_42 = arith.constant 0 : index
    %77 = vector.load %arg5[%c0_41, %c0_42] : memref<128x128xbf16, #tpu.memory_space<vmem>>, vector<32x128xbf16>
    tpu.vector_store %arg5[%c0_41, %c0_42], %76 {strides = array<i32>} : memref<128x128xbf16, #tpu.memory_space<vmem>>, vector<32x128xbf16>,
    %c127_i32_43 = arith.constant 127 : i32
    %78 = tpu.dynamic_rotate %69 by %c127_i32_43 dim 1 : vector<32x128xf32>, i32 -> vector<32x128xf32>
    %c8_44 = arith.constant 8 : index
    %c0_45 = arith.constant 0 : index
    %79 = vector.load %arg3[%c8_44, %c0_45] : memref<18x128xf32, #tpu.memory_space<vmem>>, vector<1x128xf32>
    %80 = vector.broadcast %79 : vector<1x128xf32> to vector<32x128xf32>
    %81 = arith.mulf %78, %80 : vector<32x128xf32>
    %82 = arith.truncf %81 : vector<32x128xf32> to vector<32x128xbf16>
    %c32_46 = arith.constant 32 : index
    %c0_47 = arith.constant 0 : index
    %83 = vector.load %arg5[%c32_46, %c0_47] : memref<128x128xbf16, #tpu.memory_space<vmem>>, vector<32x128xbf16>
    tpu.vector_store %arg5[%c32_46, %c0_47], %82 {strides = array<i32>} : memref<128x128xbf16, #tpu.memory_space<vmem>>, vector<32x128xbf16>,
    %c160 = arith.constant 160 : index
    %c0_48 = arith.constant 0 : index
    %84 = vector.load %arg2[%c160, %c0_48] : memref<488x128xbf16, #tpu.memory_space<vmem>>, vector<32x128xbf16>
    %c0_49 = arith.constant 0 : index
    %c0_50 = arith.constant 0 : index
    %85 = vector.load %arg5[%c0_49, %c0_50] : memref<128x128xbf16, #tpu.memory_space<vmem>>, vector<128x128xbf16>
    %cst_51 = arith.constant dense<0.000000e+00> : vector<32x128xf32>
    %86 = tpu.matmul %84, %85, %cst_51 {dimension_numbers = #tpu.dot_dimension_numbers<[1], [0], [0], [1], [0, 0, 1, 1], [], []>} : vector<32x128xbf16>, vector<128x128xbf16>, vector<32x128xf32> -> vector<32x128xf32>
    %cst_52 = arith.constant 0.000000e+00 : f32
    %87 = vector.broadcast %cst_52 : f32 to vector<32x128xf32>
    %88 = arith.cmpf ogt, %86, %87 : vector<32x128xf32>
    %89 = vector.broadcast %70 : f32 to vector<32x128xf32>
    %90 = arith.mulf %89, %86 : vector<32x128xf32>
    %91 = arith.select %88, %86, %90 : vector<32x128xi1>, vector<32x128xf32>
    %c1_i32_53 = arith.constant 1 : i32
    %92 = tpu.dynamic_rotate %91 by %c1_i32_53 dim 1 : vector<32x128xf32>, i32 -> vector<32x128xf32>
    %c9_54 = arith.constant 9 : index
    %c0_55 = arith.constant 0 : index
    %93 = vector.load %arg3[%c9_54, %c0_55] : memref<18x128xf32, #tpu.memory_space<vmem>>, vector<1x128xf32>
    %94 = vector.broadcast %93 : vector<1x128xf32> to vector<32x128xf32>
    %95 = arith.mulf %92, %94 : vector<32x128xf32>
    %96 = arith.truncf %95 : vector<32x128xf32> to vector<32x128xbf16>
    %c0_56 = arith.constant 0 : index
    %c0_57 = arith.constant 0 : index
    %97 = vector.load %arg5[%c0_56, %c0_57] : memref<128x128xbf16, #tpu.memory_space<vmem>>, vector<32x128xbf16>
    tpu.vector_store %arg5[%c0_56, %c0_57], %96 {strides = array<i32>} : memref<128x128xbf16, #tpu.memory_space<vmem>>, vector<32x128xbf16>,
    %c127_i32_58 = arith.constant 127 : i32
    %98 = tpu.dynamic_rotate %91 by %c127_i32_58 dim 1 : vector<32x128xf32>, i32 -> vector<32x128xf32>
    %c8_59 = arith.constant 8 : index
    %c0_60 = arith.constant 0 : index
    %99 = vector.load %arg3[%c8_59, %c0_60] : memref<18x128xf32, #tpu.memory_space<vmem>>, vector<1x128xf32>
    %100 = vector.broadcast %99 : vector<1x128xf32> to vector<32x128xf32>
    %101 = arith.mulf %98, %100 : vector<32x128xf32>
    %102 = arith.truncf %101 : vector<32x128xf32> to vector<32x128xbf16>
    %c32_61 = arith.constant 32 : index
    %c0_62 = arith.constant 0 : index
    %103 = vector.load %arg5[%c32_61, %c0_62] : memref<128x128xbf16, #tpu.memory_space<vmem>>, vector<32x128xbf16>
    tpu.vector_store %arg5[%c32_61, %c0_62], %102 {strides = array<i32>} : memref<128x128xbf16, #tpu.memory_space<vmem>>, vector<32x128xbf16>,
    %c192 = arith.constant 192 : index
    %c0_63 = arith.constant 0 : index
    %104 = vector.load %arg2[%c192, %c0_63] : memref<488x128xbf16, #tpu.memory_space<vmem>>, vector<32x128xbf16>
    %c0_64 = arith.constant 0 : index
    %c0_65 = arith.constant 0 : index
    %105 = vector.load %arg5[%c0_64, %c0_65] : memref<128x128xbf16, #tpu.memory_space<vmem>>, vector<128x128xbf16>
    %cst_66 = arith.constant dense<0.000000e+00> : vector<32x128xf32>
    %106 = tpu.matmul %104, %105, %cst_66 {dimension_numbers = #tpu.dot_dimension_numbers<[1], [0], [0], [1], [0, 0, 1, 1], [], []>} : vector<32x128xbf16>, vector<128x128xbf16>, vector<32x128xf32> -> vector<32x128xf32>
    %cst_67 = arith.constant 0.000000e+00 : f32
    %107 = vector.broadcast %cst_67 : f32 to vector<32x128xf32>
    %108 = arith.cmpf ogt, %106, %107 : vector<32x128xf32>
    %109 = vector.broadcast %71 : f32 to vector<32x128xf32>
    %110 = arith.mulf %109, %106 : vector<32x128xf32>
    %111 = arith.select %108, %106, %110 : vector<32x128xi1>, vector<32x128xf32>
    %112 = arith.addf %111, %69 : vector<32x128xf32>
    %c6 = arith.constant 6 : index
    %113 = memref.load %arg1[%c6] : memref<14xf32, #tpu.memory_space<smem>>
    %c7 = arith.constant 7 : index
    %114 = memref.load %arg1[%c7] : memref<14xf32, #tpu.memory_space<smem>>
    %c2_i32 = arith.constant 2 : i32
    %115 = tpu.dynamic_rotate %112 by %c2_i32 dim 1 : vector<32x128xf32>, i32 -> vector<32x128xf32>
    %c10 = arith.constant 10 : index
    %c0_68 = arith.constant 0 : index
    %116 = vector.load %arg3[%c10, %c0_68] : memref<18x128xf32, #tpu.memory_space<vmem>>, vector<1x128xf32>
    %117 = vector.broadcast %116 : vector<1x128xf32> to vector<32x128xf32>
    %118 = arith.mulf %115, %117 : vector<32x128xf32>
    %119 = arith.truncf %118 : vector<32x128xf32> to vector<32x128xbf16>
    %c0_69 = arith.constant 0 : index
    %c0_70 = arith.constant 0 : index
    %120 = vector.load %arg5[%c0_69, %c0_70] : memref<128x128xbf16, #tpu.memory_space<vmem>>, vector<32x128xbf16>
    tpu.vector_store %arg5[%c0_69, %c0_70], %119 {strides = array<i32>} : memref<128x128xbf16, #tpu.memory_space<vmem>>, vector<32x128xbf16>,
    %c126_i32 = arith.constant 126 : i32
    %121 = tpu.dynamic_rotate %112 by %c126_i32 dim 1 : vector<32x128xf32>, i32 -> vector<32x128xf32>
    %c11 = arith.constant 11 : index
    %c0_71 = arith.constant 0 : index
    %122 = vector.load %arg3[%c11, %c0_71] : memref<18x128xf32, #tpu.memory_space<vmem>>, vector<1x128xf32>
    %123 = vector.broadcast %122 : vector<1x128xf32> to vector<32x128xf32>
    %124 = arith.mulf %121, %123 : vector<32x128xf32>
    %125 = arith.truncf %124 : vector<32x128xf32> to vector<32x128xbf16>
    %c32_72 = arith.constant 32 : index
    %c0_73 = arith.constant 0 : index
    %126 = vector.load %arg5[%c32_72, %c0_73] : memref<128x128xbf16, #tpu.memory_space<vmem>>, vector<32x128xbf16>
    tpu.vector_store %arg5[%c32_72, %c0_73], %125 {strides = array<i32>} : memref<128x128xbf16, #tpu.memory_space<vmem>>, vector<32x128xbf16>,
    %c224 = arith.constant 224 : index
    %c0_74 = arith.constant 0 : index
    %127 = vector.load %arg2[%c224, %c0_74] : memref<488x128xbf16, #tpu.memory_space<vmem>>, vector<32x128xbf16>
    %c0_75 = arith.constant 0 : index
    %c0_76 = arith.constant 0 : index
    %128 = vector.load %arg5[%c0_75, %c0_76] : memref<128x128xbf16, #tpu.memory_space<vmem>>, vector<128x128xbf16>
    %cst_77 = arith.constant dense<0.000000e+00> : vector<32x128xf32>
    %129 = tpu.matmul %127, %128, %cst_77 {dimension_numbers = #tpu.dot_dimension_numbers<[1], [0], [0], [1], [0, 0, 1, 1], [], []>} : vector<32x128xbf16>, vector<128x128xbf16>, vector<32x128xf32> -> vector<32x128xf32>
    %cst_78 = arith.constant 0.000000e+00 : f32
    %130 = vector.broadcast %cst_78 : f32 to vector<32x128xf32>
    %131 = arith.cmpf ogt, %129, %130 : vector<32x128xf32>
    %132 = vector.broadcast %113 : f32 to vector<32x128xf32>
    %133 = arith.mulf %132, %129 : vector<32x128xf32>
    %134 = arith.select %131, %129, %133 : vector<32x128xi1>, vector<32x128xf32>
    %c2_i32_79 = arith.constant 2 : i32
    %135 = tpu.dynamic_rotate %134 by %c2_i32_79 dim 1 : vector<32x128xf32>, i32 -> vector<32x128xf32>
    %c10_80 = arith.constant 10 : index
    %c0_81 = arith.constant 0 : index
    %136 = vector.load %arg3[%c10_80, %c0_81] : memref<18x128xf32, #tpu.memory_space<vmem>>, vector<1x128xf32>
    %137 = vector.broadcast %136 : vector<1x128xf32> to vector<32x128xf32>
    %138 = arith.mulf %135, %137 : vector<32x128xf32>
    %139 = arith.truncf %138 : vector<32x128xf32> to vector<32x128xbf16>
    %c0_82 = arith.constant 0 : index
    %c0_83 = arith.constant 0 : index
    %140 = vector.load %arg5[%c0_82, %c0_83] : memref<128x128xbf16, #tpu.memory_space<vmem>>, vector<32x128xbf16>
    tpu.vector_store %arg5[%c0_82, %c0_83], %139 {strides = array<i32>} : memref<128x128xbf16, #tpu.memory_space<vmem>>, vector<32x128xbf16>,
    %c126_i32_84 = arith.constant 126 : i32
    %141 = tpu.dynamic_rotate %134 by %c126_i32_84 dim 1 : vector<32x128xf32>, i32 -> vector<32x128xf32>
    %c11_85 = arith.constant 11 : index
    %c0_86 = arith.constant 0 : index
    %142 = vector.load %arg3[%c11_85, %c0_86] : memref<18x128xf32, #tpu.memory_space<vmem>>, vector<1x128xf32>
    %143 = vector.broadcast %142 : vector<1x128xf32> to vector<32x128xf32>
    %144 = arith.mulf %141, %143 : vector<32x128xf32>
    %145 = arith.truncf %144 : vector<32x128xf32> to vector<32x128xbf16>
    %c32_87 = arith.constant 32 : index
    %c0_88 = arith.constant 0 : index
    %146 = vector.load %arg5[%c32_87, %c0_88] : memref<128x128xbf16, #tpu.memory_space<vmem>>, vector<32x128xbf16>
    tpu.vector_store %arg5[%c32_87, %c0_88], %145 {strides = array<i32>} : memref<128x128xbf16, #tpu.memory_space<vmem>>, vector<32x128xbf16>,
    %c256 = arith.constant 256 : index
    %c0_89 = arith.constant 0 : index
    %147 = vector.load %arg2[%c256, %c0_89] : memref<488x128xbf16, #tpu.memory_space<vmem>>, vector<32x128xbf16>
    %c0_90 = arith.constant 0 : index
    %c0_91 = arith.constant 0 : index
    %148 = vector.load %arg5[%c0_90, %c0_91] : memref<128x128xbf16, #tpu.memory_space<vmem>>, vector<128x128xbf16>
    %cst_92 = arith.constant dense<0.000000e+00> : vector<32x128xf32>
    %149 = tpu.matmul %147, %148, %cst_92 {dimension_numbers = #tpu.dot_dimension_numbers<[1], [0], [0], [1], [0, 0, 1, 1], [], []>} : vector<32x128xbf16>, vector<128x128xbf16>, vector<32x128xf32> -> vector<32x128xf32>
    %cst_93 = arith.constant 0.000000e+00 : f32
    %150 = vector.broadcast %cst_93 : f32 to vector<32x128xf32>
    %151 = arith.cmpf ogt, %149, %150 : vector<32x128xf32>
    %152 = vector.broadcast %114 : f32 to vector<32x128xf32>
    %153 = arith.mulf %152, %149 : vector<32x128xf32>
    %154 = arith.select %151, %149, %153 : vector<32x128xi1>, vector<32x128xf32>
    %155 = arith.addf %154, %112 : vector<32x128xf32>
    %c8_94 = arith.constant 8 : index
    %156 = memref.load %arg1[%c8_94] : memref<14xf32, #tpu.memory_space<smem>>
    %c9_95 = arith.constant 9 : index
    %157 = memref.load %arg1[%c9_95] : memref<14xf32, #tpu.memory_space<smem>>
    %c4_i32 = arith.constant 4 : i32
    %158 = tpu.dynamic_rotate %155 by %c4_i32 dim 1 : vector<32x128xf32>, i32 -> vector<32x128xf32>
    %c12 = arith.constant 12 : index
    %c0_96 = arith.constant 0 : index
    %159 = vector.load %arg3[%c12, %c0_96] : memref<18x128xf32, #tpu.memory_space<vmem>>, vector<1x128xf32>
    %160 = vector.broadcast %159 : vector<1x128xf32> to vector<32x128xf32>
    %161 = arith.mulf %158, %160 : vector<32x128xf32>
    %162 = arith.truncf %161 : vector<32x128xf32> to vector<32x128xbf16>
    %c0_97 = arith.constant 0 : index
    %c0_98 = arith.constant 0 : index
    %163 = vector.load %arg5[%c0_97, %c0_98] : memref<128x128xbf16, #tpu.memory_space<vmem>>, vector<32x128xbf16>
    tpu.vector_store %arg5[%c0_97, %c0_98], %162 {strides = array<i32>} : memref<128x128xbf16, #tpu.memory_space<vmem>>, vector<32x128xbf16>,
    %c124_i32 = arith.constant 124 : i32
    %164 = tpu.dynamic_rotate %155 by %c124_i32 dim 1 : vector<32x128xf32>, i32 -> vector<32x128xf32>
    %c13 = arith.constant 13 : index
    %c0_99 = arith.constant 0 : index
    %165 = vector.load %arg3[%c13, %c0_99] : memref<18x128xf32, #tpu.memory_space<vmem>>, vector<1x128xf32>
    %166 = vector.broadcast %165 : vector<1x128xf32> to vector<32x128xf32>
    %167 = arith.mulf %164, %166 : vector<32x128xf32>
    %168 = arith.truncf %167 : vector<32x128xf32> to vector<32x128xbf16>
    %c32_100 = arith.constant 32 : index
    %c0_101 = arith.constant 0 : index
    %169 = vector.load %arg5[%c32_100, %c0_101] : memref<128x128xbf16, #tpu.memory_space<vmem>>, vector<32x128xbf16>
    tpu.vector_store %arg5[%c32_100, %c0_101], %168 {strides = array<i32>} : memref<128x128xbf16, #tpu.memory_space<vmem>>, vector<32x128xbf16>,
    %c288 = arith.constant 288 : index
    %c0_102 = arith.constant 0 : index
    %170 = vector.load %arg2[%c288, %c0_102] : memref<488x128xbf16, #tpu.memory_space<vmem>>, vector<32x128xbf16>
    %c0_103 = arith.constant 0 : index
    %c0_104 = arith.constant 0 : index
    %171 = vector.load %arg5[%c0_103, %c0_104] : memref<128x128xbf16, #tpu.memory_space<vmem>>, vector<128x128xbf16>
    %cst_105 = arith.constant dense<0.000000e+00> : vector<32x128xf32>
    %172 = tpu.matmul %170, %171, %cst_105 {dimension_numbers = #tpu.dot_dimension_numbers<[1], [0], [0], [1], [0, 0, 1, 1], [], []>} : vector<32x128xbf16>, vector<128x128xbf16>, vector<32x128xf32> -> vector<32x128xf32>
    %cst_106 = arith.constant 0.000000e+00 : f32
    %173 = vector.broadcast %cst_106 : f32 to vector<32x128xf32>
    %174 = arith.cmpf ogt, %172, %173 : vector<32x128xf32>
    %175 = vector.broadcast %156 : f32 to vector<32x128xf32>
    %176 = arith.mulf %175, %172 : vector<32x128xf32>
    %177 = arith.select %174, %172, %176 : vector<32x128xi1>, vector<32x128xf32>
    %c4_i32_107 = arith.constant 4 : i32
    %178 = tpu.dynamic_rotate %177 by %c4_i32_107 dim 1 : vector<32x128xf32>, i32 -> vector<32x128xf32>
    %c12_108 = arith.constant 12 : index
    %c0_109 = arith.constant 0 : index
    %179 = vector.load %arg3[%c12_108, %c0_109] : memref<18x128xf32, #tpu.memory_space<vmem>>, vector<1x128xf32>
    %180 = vector.broadcast %179 : vector<1x128xf32> to vector<32x128xf32>
    %181 = arith.mulf %178, %180 : vector<32x128xf32>
    %182 = arith.truncf %181 : vector<32x128xf32> to vector<32x128xbf16>
    %c0_110 = arith.constant 0 : index
    %c0_111 = arith.constant 0 : index
    %183 = vector.load %arg5[%c0_110, %c0_111] : memref<128x128xbf16, #tpu.memory_space<vmem>>, vector<32x128xbf16>
    tpu.vector_store %arg5[%c0_110, %c0_111], %182 {strides = array<i32>} : memref<128x128xbf16, #tpu.memory_space<vmem>>, vector<32x128xbf16>,
    %c124_i32_112 = arith.constant 124 : i32
    %184 = tpu.dynamic_rotate %177 by %c124_i32_112 dim 1 : vector<32x128xf32>, i32 -> vector<32x128xf32>
    %c13_113 = arith.constant 13 : index
    %c0_114 = arith.constant 0 : index
    %185 = vector.load %arg3[%c13_113, %c0_114] : memref<18x128xf32, #tpu.memory_space<vmem>>, vector<1x128xf32>
    %186 = vector.broadcast %185 : vector<1x128xf32> to vector<32x128xf32>
    %187 = arith.mulf %184, %186 : vector<32x128xf32>
    %188 = arith.truncf %187 : vector<32x128xf32> to vector<32x128xbf16>
    %c32_115 = arith.constant 32 : index
    %c0_116 = arith.constant 0 : index
    %189 = vector.load %arg5[%c32_115, %c0_116] : memref<128x128xbf16, #tpu.memory_space<vmem>>, vector<32x128xbf16>
    tpu.vector_store %arg5[%c32_115, %c0_116], %188 {strides = array<i32>} : memref<128x128xbf16, #tpu.memory_space<vmem>>, vector<32x128xbf16>,
    %c320 = arith.constant 320 : index
    %c0_117 = arith.constant 0 : index
    %190 = vector.load %arg2[%c320, %c0_117] : memref<488x128xbf16, #tpu.memory_space<vmem>>, vector<32x128xbf16>
    %c0_118 = arith.constant 0 : index
    %c0_119 = arith.constant 0 : index
    %191 = vector.load %arg5[%c0_118, %c0_119] : memref<128x128xbf16, #tpu.memory_space<vmem>>, vector<128x128xbf16>
    %cst_120 = arith.constant dense<0.000000e+00> : vector<32x128xf32>
    %192 = tpu.matmul %190, %191, %cst_120 {dimension_numbers = #tpu.dot_dimension_numbers<[1], [0], [0], [1], [0, 0, 1, 1], [], []>} : vector<32x128xbf16>, vector<128x128xbf16>, vector<32x128xf32> -> vector<32x128xf32>
    %cst_121 = arith.constant 0.000000e+00 : f32
    %193 = vector.broadcast %cst_121 : f32 to vector<32x128xf32>
    %194 = arith.cmpf ogt, %192, %193 : vector<32x128xf32>
    %195 = vector.broadcast %157 : f32 to vector<32x128xf32>
    %196 = arith.mulf %195, %192 : vector<32x128xf32>
    %197 = arith.select %194, %192, %196 : vector<32x128xi1>, vector<32x128xf32>
    %198 = arith.addf %197, %155 : vector<32x128xf32>
    %c10_122 = arith.constant 10 : index
    %199 = memref.load %arg1[%c10_122] : memref<14xf32, #tpu.memory_space<smem>>
    %c11_123 = arith.constant 11 : index
    %200 = memref.load %arg1[%c11_123] : memref<14xf32, #tpu.memory_space<smem>>
    %c8_i32 = arith.constant 8 : i32
    %201 = tpu.dynamic_rotate %198 by %c8_i32 dim 1 : vector<32x128xf32>, i32 -> vector<32x128xf32>
    %c14 = arith.constant 14 : index
    %c0_124 = arith.constant 0 : index
    %202 = vector.load %arg3[%c14, %c0_124] : memref<18x128xf32, #tpu.memory_space<vmem>>, vector<1x128xf32>
    %203 = vector.broadcast %202 : vector<1x128xf32> to vector<32x128xf32>
    %204 = arith.mulf %201, %203 : vector<32x128xf32>
    %205 = arith.truncf %204 : vector<32x128xf32> to vector<32x128xbf16>
    %c0_125 = arith.constant 0 : index
    %c0_126 = arith.constant 0 : index
    %206 = vector.load %arg5[%c0_125, %c0_126] : memref<128x128xbf16, #tpu.memory_space<vmem>>, vector<32x128xbf16>
    tpu.vector_store %arg5[%c0_125, %c0_126], %205 {strides = array<i32>} : memref<128x128xbf16, #tpu.memory_space<vmem>>, vector<32x128xbf16>,
    %c120_i32 = arith.constant 120 : i32
    %207 = tpu.dynamic_rotate %198 by %c120_i32 dim 1 : vector<32x128xf32>, i32 -> vector<32x128xf32>
    %c15 = arith.constant 15 : index
    %c0_127 = arith.constant 0 : index
    %208 = vector.load %arg3[%c15, %c0_127] : memref<18x128xf32, #tpu.memory_space<vmem>>, vector<1x128xf32>
    %209 = vector.broadcast %208 : vector<1x128xf32> to vector<32x128xf32>
    %210 = arith.mulf %207, %209 : vector<32x128xf32>
    %211 = arith.truncf %210 : vector<32x128xf32> to vector<32x128xbf16>
    %c32_128 = arith.constant 32 : index
    %c0_129 = arith.constant 0 : index
    %212 = vector.load %arg5[%c32_128, %c0_129] : memref<128x128xbf16, #tpu.memory_space<vmem>>, vector<32x128xbf16>
    tpu.vector_store %arg5[%c32_128, %c0_129], %211 {strides = array<i32>} : memref<128x128xbf16, #tpu.memory_space<vmem>>, vector<32x128xbf16>,
    %c352 = arith.constant 352 : index
    %c0_130 = arith.constant 0 : index
    %213 = vector.load %arg2[%c352, %c0_130] : memref<488x128xbf16, #tpu.memory_space<vmem>>, vector<32x128xbf16>
    %c0_131 = arith.constant 0 : index
    %c0_132 = arith.constant 0 : index
    %214 = vector.load %arg5[%c0_131, %c0_132] : memref<128x128xbf16, #tpu.memory_space<vmem>>, vector<128x128xbf16>
    %cst_133 = arith.constant dense<0.000000e+00> : vector<32x128xf32>
    %215 = tpu.matmul %213, %214, %cst_133 {dimension_numbers = #tpu.dot_dimension_numbers<[1], [0], [0], [1], [0, 0, 1, 1], [], []>} : vector<32x128xbf16>, vector<128x128xbf16>, vector<32x128xf32> -> vector<32x128xf32>
    %cst_134 = arith.constant 0.000000e+00 : f32
    %216 = vector.broadcast %cst_134 : f32 to vector<32x128xf32>
    %217 = arith.cmpf ogt, %215, %216 : vector<32x128xf32>
    %218 = vector.broadcast %199 : f32 to vector<32x128xf32>
    %219 = arith.mulf %218, %215 : vector<32x128xf32>
    %220 = arith.select %217, %215, %219 : vector<32x128xi1>, vector<32x128xf32>
    %c8_i32_135 = arith.constant 8 : i32
    %221 = tpu.dynamic_rotate %220 by %c8_i32_135 dim 1 : vector<32x128xf32>, i32 -> vector<32x128xf32>
    %c14_136 = arith.constant 14 : index
    %c0_137 = arith.constant 0 : index
    %222 = vector.load %arg3[%c14_136, %c0_137] : memref<18x128xf32, #tpu.memory_space<vmem>>, vector<1x128xf32>
    %223 = vector.broadcast %222 : vector<1x128xf32> to vector<32x128xf32>
    %224 = arith.mulf %221, %223 : vector<32x128xf32>
    %225 = arith.truncf %224 : vector<32x128xf32> to vector<32x128xbf16>
    %c0_138 = arith.constant 0 : index
    %c0_139 = arith.constant 0 : index
    %226 = vector.load %arg5[%c0_138, %c0_139] : memref<128x128xbf16, #tpu.memory_space<vmem>>, vector<32x128xbf16>
    tpu.vector_store %arg5[%c0_138, %c0_139], %225 {strides = array<i32>} : memref<128x128xbf16, #tpu.memory_space<vmem>>, vector<32x128xbf16>,
    %c120_i32_140 = arith.constant 120 : i32
    %227 = tpu.dynamic_rotate %220 by %c120_i32_140 dim 1 : vector<32x128xf32>, i32 -> vector<32x128xf32>
    %c15_141 = arith.constant 15 : index
    %c0_142 = arith.constant 0 : index
    %228 = vector.load %arg3[%c15_141, %c0_142] : memref<18x128xf32, #tpu.memory_space<vmem>>, vector<1x128xf32>
    %229 = vector.broadcast %228 : vector<1x128xf32> to vector<32x128xf32>
    %230 = arith.mulf %227, %229 : vector<32x128xf32>
    %231 = arith.truncf %230 : vector<32x128xf32> to vector<32x128xbf16>
    %c32_143 = arith.constant 32 : index
    %c0_144 = arith.constant 0 : index
    %232 = vector.load %arg5[%c32_143, %c0_144] : memref<128x128xbf16, #tpu.memory_space<vmem>>, vector<32x128xbf16>
    tpu.vector_store %arg5[%c32_143, %c0_144], %231 {strides = array<i32>} : memref<128x128xbf16, #tpu.memory_space<vmem>>, vector<32x128xbf16>,
    %c384 = arith.constant 384 : index
    %c0_145 = arith.constant 0 : index
    %233 = vector.load %arg2[%c384, %c0_145] : memref<488x128xbf16, #tpu.memory_space<vmem>>, vector<32x128xbf16>
    %c0_146 = arith.constant 0 : index
    %c0_147 = arith.constant 0 : index
    %234 = vector.load %arg5[%c0_146, %c0_147] : memref<128x128xbf16, #tpu.memory_space<vmem>>, vector<128x128xbf16>
    %cst_148 = arith.constant dense<0.000000e+00> : vector<32x128xf32>
    %235 = tpu.matmul %233, %234, %cst_148 {dimension_numbers = #tpu.dot_dimension_numbers<[1], [0], [0], [1], [0, 0, 1, 1], [], []>} : vector<32x128xbf16>, vector<128x128xbf16>, vector<32x128xf32> -> vector<32x128xf32>
    %cst_149 = arith.constant 0.000000e+00 : f32
    %236 = vector.broadcast %cst_149 : f32 to vector<32x128xf32>
    %237 = arith.cmpf ogt, %235, %236 : vector<32x128xf32>
    %238 = vector.broadcast %200 : f32 to vector<32x128xf32>
    %239 = arith.mulf %238, %235 : vector<32x128xf32>
    %240 = arith.select %237, %235, %239 : vector<32x128xi1>, vector<32x128xf32>
    %241 = arith.addf %240, %198 : vector<32x128xf32>
    %c12_150 = arith.constant 12 : index
    %242 = memref.load %arg1[%c12_150] : memref<14xf32, #tpu.memory_space<smem>>
    %c13_151 = arith.constant 13 : index
    %243 = memref.load %arg1[%c13_151] : memref<14xf32, #tpu.memory_space<smem>>
    %c16_i32 = arith.constant 16 : i32
    %244 = tpu.dynamic_rotate %241 by %c16_i32 dim 1 : vector<32x128xf32>, i32 -> vector<32x128xf32>
    %c16 = arith.constant 16 : index
    %c0_152 = arith.constant 0 : index
    %245 = vector.load %arg3[%c16, %c0_152] : memref<18x128xf32, #tpu.memory_space<vmem>>, vector<1x128xf32>
    %246 = vector.broadcast %245 : vector<1x128xf32> to vector<32x128xf32>
    %247 = arith.mulf %244, %246 : vector<32x128xf32>
    %248 = arith.truncf %247 : vector<32x128xf32> to vector<32x128xbf16>
    %c0_153 = arith.constant 0 : index
    %c0_154 = arith.constant 0 : index
    %249 = vector.load %arg5[%c0_153, %c0_154] : memref<128x128xbf16, #tpu.memory_space<vmem>>, vector<32x128xbf16>
    tpu.vector_store %arg5[%c0_153, %c0_154], %248 {strides = array<i32>} : memref<128x128xbf16, #tpu.memory_space<vmem>>, vector<32x128xbf16>,
    %c112_i32 = arith.constant 112 : i32
    %250 = tpu.dynamic_rotate %241 by %c112_i32 dim 1 : vector<32x128xf32>, i32 -> vector<32x128xf32>
    %c17 = arith.constant 17 : index
    %c0_155 = arith.constant 0 : index
    %251 = vector.load %arg3[%c17, %c0_155] : memref<18x128xf32, #tpu.memory_space<vmem>>, vector<1x128xf32>
    %252 = vector.broadcast %251 : vector<1x128xf32> to vector<32x128xf32>
    %253 = arith.mulf %250, %252 : vector<32x128xf32>
    %254 = arith.truncf %253 : vector<32x128xf32> to vector<32x128xbf16>
    %c32_156 = arith.constant 32 : index
    %c0_157 = arith.constant 0 : index
    %255 = vector.load %arg5[%c32_156, %c0_157] : memref<128x128xbf16, #tpu.memory_space<vmem>>, vector<32x128xbf16>
    tpu.vector_store %arg5[%c32_156, %c0_157], %254 {strides = array<i32>} : memref<128x128xbf16, #tpu.memory_space<vmem>>, vector<32x128xbf16>,
    %c416 = arith.constant 416 : index
    %c0_158 = arith.constant 0 : index
    %256 = vector.load %arg2[%c416, %c0_158] : memref<488x128xbf16, #tpu.memory_space<vmem>>, vector<32x128xbf16>
    %c0_159 = arith.constant 0 : index
    %c0_160 = arith.constant 0 : index
    %257 = vector.load %arg5[%c0_159, %c0_160] : memref<128x128xbf16, #tpu.memory_space<vmem>>, vector<128x128xbf16>
    %cst_161 = arith.constant dense<0.000000e+00> : vector<32x128xf32>
    %258 = tpu.matmul %256, %257, %cst_161 {dimension_numbers = #tpu.dot_dimension_numbers<[1], [0], [0], [1], [0, 0, 1, 1], [], []>} : vector<32x128xbf16>, vector<128x128xbf16>, vector<32x128xf32> -> vector<32x128xf32>
    %cst_162 = arith.constant 0.000000e+00 : f32
    %259 = vector.broadcast %cst_162 : f32 to vector<32x128xf32>
    %260 = arith.cmpf ogt, %258, %259 : vector<32x128xf32>
    %261 = vector.broadcast %242 : f32 to vector<32x128xf32>
    %262 = arith.mulf %261, %258 : vector<32x128xf32>
    %263 = arith.select %260, %258, %262 : vector<32x128xi1>, vector<32x128xf32>
    %c16_i32_163 = arith.constant 16 : i32
    %264 = tpu.dynamic_rotate %263 by %c16_i32_163 dim 1 : vector<32x128xf32>, i32 -> vector<32x128xf32>
    %c16_164 = arith.constant 16 : index
    %c0_165 = arith.constant 0 : index
    %265 = vector.load %arg3[%c16_164, %c0_165] : memref<18x128xf32, #tpu.memory_space<vmem>>, vector<1x128xf32>
    %266 = vector.broadcast %265 : vector<1x128xf32> to vector<32x128xf32>
    %267 = arith.mulf %264, %266 : vector<32x128xf32>
    %268 = arith.truncf %267 : vector<32x128xf32> to vector<32x128xbf16>
    %c0_166 = arith.constant 0 : index
    %c0_167 = arith.constant 0 : index
    %269 = vector.load %arg5[%c0_166, %c0_167] : memref<128x128xbf16, #tpu.memory_space<vmem>>, vector<32x128xbf16>
    tpu.vector_store %arg5[%c0_166, %c0_167], %268 {strides = array<i32>} : memref<128x128xbf16, #tpu.memory_space<vmem>>, vector<32x128xbf16>,
    %c112_i32_168 = arith.constant 112 : i32
    %270 = tpu.dynamic_rotate %263 by %c112_i32_168 dim 1 : vector<32x128xf32>, i32 -> vector<32x128xf32>
    %c17_169 = arith.constant 17 : index
    %c0_170 = arith.constant 0 : index
    %271 = vector.load %arg3[%c17_169, %c0_170] : memref<18x128xf32, #tpu.memory_space<vmem>>, vector<1x128xf32>
    %272 = vector.broadcast %271 : vector<1x128xf32> to vector<32x128xf32>
    %273 = arith.mulf %270, %272 : vector<32x128xf32>
    %274 = arith.truncf %273 : vector<32x128xf32> to vector<32x128xbf16>
    %c32_171 = arith.constant 32 : index
    %c0_172 = arith.constant 0 : index
    %275 = vector.load %arg5[%c32_171, %c0_172] : memref<128x128xbf16, #tpu.memory_space<vmem>>, vector<32x128xbf16>
    tpu.vector_store %arg5[%c32_171, %c0_172], %274 {strides = array<i32>} : memref<128x128xbf16, #tpu.memory_space<vmem>>, vector<32x128xbf16>,
    %c448 = arith.constant 448 : index
    %c0_173 = arith.constant 0 : index
    %276 = vector.load %arg2[%c448, %c0_173] : memref<488x128xbf16, #tpu.memory_space<vmem>>, vector<32x128xbf16>
    %c0_174 = arith.constant 0 : index
    %c0_175 = arith.constant 0 : index
    %277 = vector.load %arg5[%c0_174, %c0_175] : memref<128x128xbf16, #tpu.memory_space<vmem>>, vector<128x128xbf16>
    %cst_176 = arith.constant dense<0.000000e+00> : vector<32x128xf32>
    %278 = tpu.matmul %276, %277, %cst_176 {dimension_numbers = #tpu.dot_dimension_numbers<[1], [0], [0], [1], [0, 0, 1, 1], [], []>} : vector<32x128xbf16>, vector<128x128xbf16>, vector<32x128xf32> -> vector<32x128xf32>
    %cst_177 = arith.constant 0.000000e+00 : f32
    %279 = vector.broadcast %cst_177 : f32 to vector<32x128xf32>
    %280 = arith.cmpf ogt, %278, %279 : vector<32x128xf32>
    %281 = vector.broadcast %243 : f32 to vector<32x128xf32>
    %282 = arith.mulf %281, %278 : vector<32x128xf32>
    %283 = arith.select %280, %278, %282 : vector<32x128xi1>, vector<32x128xf32>
    %284 = arith.addf %283, %241 : vector<32x128xf32>
    %285 = arith.truncf %284 : vector<32x128xf32> to vector<32x128xbf16>
    %c0_178 = arith.constant 0 : index
    %c0_179 = arith.constant 0 : index
    %286 = vector.load %arg5[%c0_178, %c0_179] : memref<128x128xbf16, #tpu.memory_space<vmem>>, vector<32x128xbf16>
    tpu.vector_store %arg5[%c0_178, %c0_179], %285 {strides = array<i32>} : memref<128x128xbf16, #tpu.memory_space<vmem>>, vector<32x128xbf16>,
    %c480 = arith.constant 480 : index
    %c0_180 = arith.constant 0 : index
    %287 = vector.load %arg2[%c480, %c0_180] : memref<488x128xbf16, #tpu.memory_space<vmem>>, vector<8x128xbf16>
    %c0_181 = arith.constant 0 : index
    %c0_182 = arith.constant 0 : index
    %288 = vector.load %arg5[%c0_181, %c0_182] : memref<128x128xbf16, #tpu.memory_space<vmem>>, vector<128x128xbf16>
    %cst_183 = arith.constant dense<0.000000e+00> : vector<8x128xf32>
    %289 = tpu.matmul %287, %288, %cst_183 {dimension_numbers = #tpu.dot_dimension_numbers<[1], [0], [0], [1], [0, 0, 1, 1], [], []>} : vector<8x128xbf16>, vector<128x128xbf16>, vector<8x128xf32> -> vector<8x128xf32>
    %c0_184 = arith.constant 0 : index
    %c0_185 = arith.constant 0 : index
    %290 = vector.load %arg3[%c0_184, %c0_185] : memref<18x128xf32, #tpu.memory_space<vmem>>, vector<8x128xf32>
    %291 = arith.addf %289, %290 : vector<8x128xf32>
    %c0_186 = arith.constant 0 : index
    %c0_187 = arith.constant 0 : index
    %292 = vector.load %arg4[%c0_186, %c0_187] : memref<8x128xf32, #tpu.memory_space<vmem>>, vector<8x128xf32>
    tpu.vector_store %arg4[%c0_186, %c0_187], %291 {strides = array<i32>} : memref<8x128xf32, #tpu.memory_space<vmem>>, vector<8x128xf32>,
    return
  }
}

</mosaic_0001>

<bundles_post_ra>
// kernel: tpu_custom_call.1
= control target key start
LH: loop header
LB: loop body
LE: loop exit
PB: predicated region body
PF: predicated region fallthrough
CT: control target
= control target key end

     0   :  { %9 = vsyncpa [#allocation4], 0  ;;  %s5218_s0 = inlined_call_operand.hbm [shape: f32[8,128], index: 0, kind: input, shape index: {}]   ;;  %s5219_s1 = inlined_call_operand.vmem [shape: f32[14], index: 1, kind: input, shape index: {}]   ;;  %s5220_s2 = inlined_call_operand.hbm [shape: bf16[488,128], index: 2, kind: input, shape index: {}]   ;;  %s5221_s3 = inlined_call_operand.hbm [shape: f32[18,128], index: 3, kind: input, shape index: {}]   ;;  %s5222_s4 = inlined_call_operand.hbm [shape: f32[8,128], index: 4, kind: output, shape index: {}]  }
   0x1   :  { %10 = vsyncpa [#allocation6], 0 }
   0x2   :  { %11 = vsyncpa [#allocation9], 0 }
   0x3   :  { %12 = vsyncpa [#allocation5], 0  ;;  %s4826_s15 = smov [#allocation8]  }
   0x4   :  { %s38_s16 = sshll.u32 %s4826_s15, 4  ;;  %s39_s16 = int_to_ptr.vmem [resolvable:$true] %s38_s16 }
   0x5   :  { %s4734_s17 = scalar_lea.vmem %s39_s16, 3904  ;;  %p4739_p1 = scmp.lt.s32.totalorder %s39_s16, %s39_s16 }
   0x6   :  { %p4735_p0 = scmp.ne.s32.totalorder %s39_s16, %s4734_s17  ;;  %p4740_p2 = scmp.lt.s32.totalorder %s4734_s17, %s4734_s17 }
   0x8   :  { %p4741_p3 = por %p4740_p2, %p4739_p1 }
   0xa   :  { %p4742_p4 = pnand %p4741_p3, %p4735_p0 }
   0xc   :  { %4745 = shalt.err (!%p4742_p4)
}
   0xd   :  { %s4827_s18 = smov 64   ;;  %s4828_s19 = smov 4  }
   0xe   :  { %44 = dma.hbm_to_vmem [thread:$0]  %s5220_s2, 3904, %s39_s16, [#allocation9], %s4827_s18, %s4827_s18, %s4828_s19  }
   0xf   :  { %s4829_s22 = smov [#allocation3]   ;;  %s29_s26 = sshll.u32 %s5219_s1, 4  ;;  %s30_s26 = int_to_ptr.vmem [resolvable:$true] %s29_s26 }
  0x10   :  { %s19_s23 = sshll.u32 %s4829_s22, 4  ;;  %s20_s23 = int_to_ptr.vmem [resolvable:$true] %s19_s23 }
  0x11   :  { %s4754_s27 = scalar_lea.vmem %s20_s23, 128  ;;  %p4759_p6 = scmp.lt.s32.totalorder %s20_s23, %s20_s23 }
  0x12   :  { %p4755_p5 = scmp.ne.s32.totalorder %s20_s23, %s4754_s27  ;;  %p4760_p7 = scmp.lt.s32.totalorder %s4754_s27, %s4754_s27 }
  0x14   :  { %p4761_p8 = por %p4760_p7, %p4759_p6 }
  0x16   :  { %p4762_p9 = pnand %p4761_p8, %p4755_p5 }
  0x18   :  { %4765 = shalt.err (!%p4762_p9)
}
  0x19   :  { %22 = dma.hbm_to_vmem [thread:$0]  %s5218_s0, 128, %s20_s23, [#allocation4]  }
  0x1a   :  { %s4766_s2 = scalar_lea.vmem %s30_s26, 16  ;;  %p4771_p11 = scmp.lt.s32.totalorder %s30_s26, %s30_s26 }
  0x1b   :  { %p4767_p10 = scmp.ne.s32.totalorder %s30_s26, %s4766_s2  ;;  %p4772_p12 = scmp.lt.s32.totalorder %s4766_s2, %s4766_s2 }
  0x1d   :  { %p4773_p13 = por %p4772_p12, %p4771_p11 }
  0x1f   :  { %p4774_p0 = pnand %p4773_p13, %p4767_p10 }
  0x21   :  { %4777 = shalt.err (!%p4774_p0)
}
  0x22   :  { %s4830_s1 = smov [#allocation7]   ;;  %s4831_s30 = smov [#allocation10]  }
  0x23   :  { %32 = dma.vmem_to_smem %s30_s26, 16, %s4830_s1, [#allocation6]  }
  0x24   :  { %s50_s5 = sshll.u32 %s4831_s30, 4  ;;  %s51_s5 = int_to_ptr.vmem [resolvable:$true] %s50_s5 }
  0x25   :  { %s4786_s6 = scalar_lea.vmem %s51_s5, 384  ;;  %p4791_p2 = scmp.lt.s32.totalorder %s51_s5, %s51_s5 }
  0x26   :  { %p4787_p1 = scmp.ne.s32.totalorder %s51_s5, %s4786_s6  ;;  %p4792_p3 = scmp.lt.s32.totalorder %s4786_s6, %s4786_s6 }
  0x28   :  { %p4793_p4 = por %p4792_p3, %p4791_p2 }
  0x2a   :  { %p4794_p5 = pnand %p4793_p4, %p4787_p1 }
  0x2c   :  { %4797 = shalt.err (!%p4794_p5)
}
  0x2d   :  { %s4832_s0 = smov 128   ;;  %s4833_s7 = smov 8  }
  0x2e   :  { %56 = dma.hbm_to_vmem [thread:$0]  %s5221_s3, 384, %s51_s5, [#allocation9], %s4832_s0, %s4832_s0, %s4833_s7  }
  0x2f   :  { %4818 = dma.done.wait [#allocation4], 128  }
  0x30   :  { %4819 = vsyncadd [#allocation4], 4294967168 }
  0x31   :  { %4820 = dma.done.wait [#allocation6], 16  }
  0x32   :  { %4821 = vsyncadd [#allocation6], 4294967280 }
  0x33   :  { %4822 = dma.done.wait [#allocation9], 4288  }
  0x34   :  { %4823 = vsyncadd [#allocation9], 4294963008 }
  0x35   :  { %69 = sfence }
  0x36   :  { %v71_v0 = vlaneseq  ;;  %v4834_v1 = vmov 839922192   ;;  %v4835_v3 = vmov 1985246804   ;;  %v4584_v5 = vld [vmem:[#allocation8] sm:$0xff]   ;;  %v296_v9 = vld [vmem:[#allocation3] sm:$0xff] }
  0x37   :  { %v153_v2 = vunpack.c.l.s4 %v4834_v1  ;;  %v160_v4 = vunpack.c.l.s4 %v4835_v3  ;;  %4266 = vmatprep.mubr.bf16.mxu0 %v4584_v5  ;;  %v4836_v13 = vmov 0.0|0.0   ;;  %v4837_v16 = vmov 0.0   ;;  %v4585_v33 = vld [vmem:[#allocation8 + $0x8] sm:$0xff]   ;;  %v4594_v39 = vld [vmem:[#allocation8 + $0x10] sm:$0xff]   ;;  %v4595_v40 = vld [vmem:[#allocation8 + $0x18] sm:$0xff]   ;;  %s297_s3 = sld [smem:[#allocation7]] }
  0x38   :  { %v72_v6 = vshrl.u32 %v71_v0, 7  ;;  %v3402_v14 = vcombine.high %v4836_v13, %v4836_v13  ;;  %v3401_v15 = vcombine.low %v4836_v13, %v4836_v13  ;;  %v3799_v17 = vpack.c.bf16 %v4837_v16, %v296_v9  ;;  %v4596_v41 = vld [vmem:[#allocation8 + $0x20] sm:$0xff]   ;;  %v4597_v59 = vld [vmem:[#allocation8 + $0x28] sm:$0xff]   ;;  %s3398_s10 = sld [smem:[#allocation7 + $0x1]]  ;;  %s4838_s11 = smov 127  }
  0x39   :  { %v154_v7 = vunpack.c.0.s8 %v153_v2  ;;  %v161_v8 = vunpack.c.0.s8 %v160_v4  ;;  %4290 = vmatprep.mubr.bf16.mxu1 %v4596_v41  ;;  %s3429_s12 = sld [smem:[#allocation7 + $0x2]]  ;;  %s4839_s14 = smov 1  }
  0x3a   :  { %v80_v10 = vadd.s32 64, %v72_v6  ;;  %s3430_s13 = sld [smem:[#allocation7 + $0x3]]  ;;  %s4840_s17 = smov 126  }
  0x3b   :  { %v157_v11 = vsub.s32 %v154_v7, %v72_v6  ;;  %v164_v12 = vsub.s32 %v161_v8, %v72_v6  ;;  %s3469_s15 = sld [smem:[#allocation7 + $0x4]]  ;;  %s4841_s18 = smov 2  }
  0x3c   :  { %vm96_vm0 = vcmp.eq.s32.totalorder %v80_v10, 64  ;;  %s3470_s16 = sld [smem:[#allocation7 + $0x5]]  ;;  %s4842_s22 = smov 124  }
  0x3d   :  { %v158_v18 = vrot.slane %v4836_v13, %v157_v11  ;;  %v165_v19 = vrot.slane %v4836_v13, %v164_v12  ;;  %v3397_v20 = vsel %vm96_vm0, 1.0, %v4837_v16  ;;  %v484_v43 = vstv %s297_s3  ;;  %s3511_s20 = sld [smem:[#allocation7 + $0x6]]  ;;  %s4843_s24 = smov 120  }
  0x3e   :  { %v140_v21 = vpack.c.bf16 %v4837_v16, %v3397_v20  ;;  %v646_v63 = vstv %s3398_s10  ;;  %s3512_s21 = sld [smem:[#allocation7 + $0x7]]  ;;  %s4844_s27 = smov 112  }
  0x3f   :  { %283 = vst [vmem:[#allocation2 + $0xc] sm:$0xf] %v165_v19  ;;  %294 = vst [vmem:[#allocation2 + $0x38] sm:$0xf] %v158_v18  ;;  %s3553_s23 = sld [smem:[#allocation7 + $0x8]]  ;;  %s4845_s28 = smov 16  }
  0x40   :  { %295 = vst [vmem:[#allocation2 + $0x3c] sm:$0xf] %v165_v19  ;;  %280 = vst [vmem:[#allocation2] sm:$0xf] %v158_v18  ;;  %v214_v22 = vrot.slane %v140_v21, %v157_v11  ;;  %v221_v23 = vrot.slane %v140_v21, %v164_v12  ;;  %s3595_s25 = sld [smem:[#allocation7 + $0xa]]  ;;  %s4847_s1 = smov [#allocation11]  }
  0x41   :  { %281 = vst [vmem:[#allocation2 + $0x4] sm:$0xf] %v165_v19  ;;  %282 = vst [vmem:[#allocation2 + $0x8] sm:$0xf] %v158_v18  ;;  %s3596_s26 = sld [smem:[#allocation7 + $0xb]]  ;;  %s3386_s30 = sshll.u32 %s4847_s1, 4  ;;  %s3387_s30 = int_to_ptr.vmem [resolvable:$true] %s3386_s30 }
  0x42   :  { %284 = vst [vmem:[#allocation2 + $0x10] sm:$0xf] %v158_v18  ;;  %285 = vst [vmem:[#allocation2 + $0x14] sm:$0xf] %v165_v19  ;;  %s3637_s29 = sld [smem:[#allocation7 + $0xc]]  ;;  %s4798_s5 = scalar_lea.vmem %s3387_s30, 128 }
  0x43   :  { %286 = vst [vmem:[#allocation2 + $0x18] sm:$0xf] %v158_v18  ;;  %287 = vst [vmem:[#allocation2 + $0x1c] sm:$0xf] %v165_v19  ;;  %s3638_s2 = sld [smem:[#allocation7 + $0xd]]  ;;  %p4799_p6 = scmp.ne.s32.totalorder %s3387_s30, %s4798_s5 }
  0x44   :  { %290 = vst [vmem:[#allocation2 + $0x28] sm:$0xf] %v158_v18  ;;  %291 = vst [vmem:[#allocation2 + $0x2c] sm:$0xf] %v165_v19  ;;  %p4803_p7 = scmp.lt.s32.totalorder %s3387_s30, %s3387_s30  ;;  %p4804_p8 = scmp.lt.s32.totalorder %s4798_s5, %s4798_s5 }
  0x45   :  { %292 = vst [vmem:[#allocation2 + $0x30] sm:$0xf] %v158_v18  ;;  %293 = vst [vmem:[#allocation2 + $0x34] sm:$0xf] %v165_v19 }
  0x46   :  { %318 = vst [vmem:[#allocation2 + $0xc] sm:$0xf] %v3402_v14  ;;  %317 = vst [vmem:[#allocation2 + $0x8] sm:$0xf] %v3401_v15  ;;  %p4805_p9 = por %p4804_p8, %p4803_p7 }
  0x47   :  { %3800 = vst [vmem:[#allocation2] sm:$0xff] %v3799_v17   ;;  %288 = vst [vmem:[#allocation2 + $0x20] sm:$0xf] %v214_v22  ;;  %v4576_v24 = vld [vmem:[#allocation2 + $0x38] sm:$0xff]  }
  0x48   :  { %289 = vst [vmem:[#allocation2 + $0x24] sm:$0xf] %v221_v23  ;;  %4250 = vmatprep.subr.bf16.mxu0 %v4576_v24  ;;  %v4586_v28 = vld [vmem:[#allocation2 + $0x38] sm:$0xff]   ;;  %p4806_p10 = pnand %p4805_p9, %p4799_p6 }
  0x49   :  { %4251 = vmatpush3.bf16.msra.mxu0 %v4576_v24  ;;  %4274 = vmatprep.subr.bf16.mxu1 %v4586_v28  ;;  %v4581_v30 = vld [vmem:[#allocation2 + $0x10] sm:$0xff]   ;;  %v4598_v60 = vld [vmem:[#allocation2 + $0x38] sm:$0xff]  }
  0x4a   :  { %v4580_v29 = vld [vmem:[#allocation2 + $0x18] sm:$0xff]   ;;  %4275 = vmatpush3.bf16.msra.mxu1 %v4586_v28  ;;  %v4591_v38 = vld [vmem:[#allocation2 + $0x10] sm:$0xff]  }
  0x4b   :  { %v4578_v26 = vld [vmem:[#allocation2 + $0x28] sm:$0xff]   ;;  %v4590_v37 = vld [vmem:[#allocation2 + $0x18] sm:$0xff]  }
  0x4c   :  { %v4577_v25 = vld [vmem:[#allocation2 + $0x30] sm:$0xff]   ;;  %v4588_v35 = vld [vmem:[#allocation2 + $0x28] sm:$0xff]   ;;  %v4606_v24 = vld [vmem:[#allocation8 + $0x30] sm:$0xff]  }
  0x4d   :  { %4252 = vmatprep.subr.bf16.mxu0 %v4577_v25  ;;  %v4582_v31 = vld [vmem:[#allocation2 + $0x8] sm:$0xff]   ;;  %v4587_v34 = vld [vmem:[#allocation2 + $0x30] sm:$0xff]   ;;  %v4608_v41 = vld [vmem:[#allocation2 + $0x38] sm:$0xff]  }
  0x4e   :  { %4253 = vmatpush3.bf16.msra.mxu0 %v4577_v25  ;;  %v4583_v32 = vld [vmem:[#allocation2] sm:$0xff]   ;;  %4276 = vmatprep.subr.bf16.mxu1 %v4587_v34  ;;  %v4599_v61 = vld [vmem:[#allocation2 + $0x30] sm:$0xff]   ;;  %v4600_v1 = vld [vmem:[#allocation2 + $0x28] sm:$0xff]  }
  0x4f   :  { %v4579_v27 = vld [vmem:[#allocation2 + $0x20] sm:$0xff]   ;;  %4254 = vmatprep.subr.bf16.mxu0 %v4578_v26  ;;  %4277 = vmatpush3.bf16.msra.mxu1 %v4587_v34 }
  0x50   :  { %4278 = vmatprep.subr.bf16.mxu1 %v4588_v35  ;;  %v4589_v36 = vld [vmem:[#allocation2 + $0x20] sm:$0xff]  }
  0x51   :  { %v4601_v7 = vld [vmem:[#allocation2 + $0x20] sm:$0xff]  }
  0x52   :  { %4255 = vmatpush3.bf16.msra.mxu0 %v4578_v26  ;;  %v4910_v26 = vld [vmem:[#allocation10 + $0x8] ss:$0 sm:$0xff] }
  0x53   :  { %4256 = vmatprep.subr.bf16.mxu0 %v4579_v27  ;;  %4279 = vmatpush3.bf16.msra.mxu1 %v4588_v35 }
  0x54   :  { %4280 = vmatprep.subr.bf16.mxu1 %v4589_v36 }
  0x56   :  { %4257 = vmatpush3.bf16.msra.mxu0 %v4579_v27 }
  0x57   :  { %4258 = vmatprep.subr.bf16.mxu0 %v4580_v29  ;;  %4281 = vmatpush3.bf16.msra.mxu1 %v4589_v36 }
  0x58   :  { %4282 = vmatprep.subr.bf16.mxu1 %v4590_v37 }
  0x5a   :  { %4259 = vmatpush3.bf16.msra.mxu0 %v4580_v29 }
  0x5b   :  { %4260 = vmatprep.subr.bf16.mxu0 %v4581_v30  ;;  %4283 = vmatpush3.bf16.msra.mxu1 %v4590_v37 }
  0x5c   :  { %4284 = vmatprep.subr.bf16.mxu1 %v4591_v38 }
  0x5e   :  { %4261 = vmatpush3.bf16.msra.mxu0 %v4581_v30 }
  0x5f   :  { %4262 = vmatprep.subr.bf16.mxu0 %v4582_v31  ;;  %4285 = vmatpush3.bf16.msra.mxu1 %v4591_v38 }
  0x62   :  { %4263 = vmatpush3.bf16.msra.mxu0 %v4582_v31 }
  0x63   :  { %4264 = vmatprep.subr.bf16.mxu0 %v4583_v32 }
  0x66   :  { %4265 = vmatpush3.bf16.msra.mxu0 %v4583_v32 }
  0x67   :  { %4294 = vmatprep.subr.bf16.mxu0 %v4598_v60 }
  0x69   :  { %4267 = vmatmul.mubr.bf16.vlgmr.msra.gmra.mxu0 %v4585_v33 }
  0x6a   :  { %4270 = vmatprep.mubr.bf16.mxu0 %v4594_v39  ;;  %4295 = vmatpush3.bf16.msra.mxu0 %v4598_v60  ;;  %v4616_v60 = vld [vmem:[#allocation8 + $0x40] sm:$0xff]  }
  0x6b   :  { %4296 = vmatprep.subr.bf16.mxu0 %v4599_v61 }
  0x6e   :  { %4297 = vmatpush3.bf16.msra.mxu0 %v4599_v61 }
  0x6f   :  { %4298 = vmatprep.subr.bf16.mxu0 %v4600_v1 }
  0x71   :  { %4271 = vmatmul.mubr.bf16.gmra.mxu0 %v4595_v40  ;;  %v4607_v40 = vld [vmem:[#allocation8 + $0x38] sm:$0xff]  }
  0x72   :  { %4299 = vmatpush3.bf16.msra.mxu0 %v4600_v1  ;;  %4310 = vmatprep.mubr.bf16.mxu0 %v4606_v24 }
  0x73   :  { %4300 = vmatprep.subr.bf16.mxu0 %v4601_v7 }
  0x76   :  { %4301 = vmatpush3.bf16.msra.mxu0 %v4601_v7 }
 0x129   :  { %v4268_v42 = vpop.f32.mrf.mxu0 }
 0x12a   :  { %v487_v45 = vmul.f32 %v4268_v42, %v484_v43  ;;  %vm482_vm1 = vcmp.gt.f32.partialorder %v4268_v42, 0.0 }
 0x12b   :  { %v449_v44 = vpop.f32.mrf.mxu0 }
 0x12c   :  { %v485_v47 = vmul.f32 %v484_v43, %v449_v44  ;;  %vm480_vm3 = vcmp.gt.f32.partialorder %v449_v44, 0.0  ;;  %v491_v50 = vsel %vm482_vm1, %v4268_v42, %v487_v45  ;;  %v4609_v42 = vld [vmem:[#allocation2 + $0x30] sm:$0xff]  }
 0x12d   :  { %v4269_v46 = vpop.f32.mrf.mxu0 }
 0x12e   :  { %vm483_vm2 = vcmp.gt.f32.partialorder %v4269_v46, 0.0  ;;  %v488_v48 = vmul.f32 %v4269_v46, %v484_v43  ;;  %v489_v54 = vsel %vm480_vm3, %v449_v44, %v485_v47  ;;  %v4610_v44 = vld [vmem:[#allocation2 + $0x28] sm:$0xff]  }
 0x12f   :  { %v452_v49 = vpop.f32.mrf.mxu0 }
 0x130   :  { %v492_v51 = vsel %vm483_vm2, %v4269_v46, %v488_v48  ;;  %vm481_vm4 = vcmp.gt.f32.partialorder %v452_v49, 0.0  ;;  %v486_v52 = vmul.f32 %v484_v43, %v452_v49  ;;  %v851_v43 = vstv %s3429_s12  ;;  %v4611_v48 = vld [vmem:[#allocation2 + $0x20] sm:$0xff]  }
 0x131   :  { %v3809_v53 = vpack.c.bf16 %v492_v51, %v491_v50  ;;  %v4272_v62 = vpop.f32.mrf.mxu0 }
 0x132   :  { %v490_v55 = vsel %vm481_vm4, %v452_v49, %v486_v52 }
 0x133   :  { %4061 = vst [vmem:[#allocation2 + $0x8] sm:$0xff] %v3809_v53   ;;  %v3804_v56 = vpack.c.bf16 %v490_v55, %v489_v54  ;;  %v465_v2 = vpop.f32.mrf.mxu0 }
 0x135   :  { %3805 = vst [vmem:[#allocation2] sm:$0xff] %v3804_v56   ;;  %v4273_v10 = vpop.f32.mrf.mxu0 }
 0x137   :  { %v468_v19 = vpop.f32.mrf.mxu0 }
 0x13a   :  { %v4592_v57 = vld [vmem:[#allocation2 + $0x8] sm:$0xff]  }
 0x13b   :  { %4286 = vmatprep.subr.bf16.mxu1 %v4592_v57 }
 0x13c   :  { %v4593_v58 = vld [vmem:[#allocation2] sm:$0xff]   ;;  %4287 = vmatpush3.bf16.msra.mxu1 %v4592_v57 }
 0x13d   :  { %4288 = vmatprep.subr.bf16.mxu1 %v4593_v58 }
 0x140   :  { %4289 = vmatpush3.bf16.msra.mxu1 %v4593_v58 }
 0x141   :  { %4314 = vmatprep.subr.bf16.mxu1 %v4608_v41 }
 0x143   :  { %4291 = vmatmul.mubr.bf16.vlgmr.msra.gmra.mxu1 %v4597_v59 }
 0x144   :  { %4315 = vmatpush3.bf16.msra.mxu1 %v4608_v41  ;;  %4330 = vmatprep.mubr.bf16.mxu1 %v4616_v60 }
 0x145   :  { %4316 = vmatprep.subr.bf16.mxu1 %v4609_v42 }
 0x148   :  { %4317 = vmatpush3.bf16.msra.mxu1 %v4609_v42 }
 0x149   :  { %4318 = vmatprep.subr.bf16.mxu1 %v4610_v44 }
 0x14c   :  { %4319 = vmatpush3.bf16.msra.mxu1 %v4610_v44 }
 0x14d   :  { %4320 = vmatprep.subr.bf16.mxu1 %v4611_v48 }
 0x150   :  { %4321 = vmatpush3.bf16.msra.mxu1 %v4611_v48 }
 0x203   :  { %v4292_v0 = vpop.f32.mrf.mxu1 }
 0x204   :  { %vm644_vm5 = vcmp.gt.f32.partialorder %v4292_v0, 0.0  ;;  %v649_v3 = vmul.f32 %v4292_v0, %v646_v63 }
 0x205   :  { %v627_v4 = vpop.f32.mrf.mxu1 }
 0x206   :  { %v653_v5 = vsel %vm644_vm5, %v4292_v0, %v649_v3  ;;  %vm642_vm6 = vcmp.gt.f32.partialorder %v627_v4, 0.0  ;;  %v647_v6 = vmul.f32 %v646_v63, %v627_v4 }
 0x207   :  { %v4293_v8 = vpop.f32.mrf.mxu1  ;;  %v4890_v9 = vadd.f32 %v4272_v62, %v653_v5 }
 0x208   :  { %v651_v11 = vsel %vm642_vm6, %v627_v4, %v647_v6  ;;  %vm645_vm7 = vcmp.gt.f32.partialorder %v4293_v8, 0.0  ;;  %v650_v12 = vmul.f32 %v4293_v8, %v646_v63 }
 0x209   :  { %v630_v13 = vpop.f32.mrf.mxu1  ;;  %685 = vrot.lane.b32.xlu0 %v4890_v9, %s4838_s11  ;;  %v4894_v14 = vadd.f32 %v651_v11, %v465_v2 }
 0x20a   :  { %v654_v15 = vsel %vm645_vm7, %v4293_v8, %v650_v12  ;;  %vm643_vm8 = vcmp.gt.f32.partialorder %v630_v13, 0.0  ;;  %v648_v17 = vmul.f32 %v646_v63, %v630_v13  ;;  %v4617_v12 = vld [vmem:[#allocation8 + $0x48] sm:$0xff]  }
 0x20b   :  { %681 = vrot.lane.b32.xlu1 %v4894_v14, %s4838_s11  ;;  %v4898_v18 = vadd.f32 %v4273_v10, %v654_v15  ;;  %v4619_v15 = vld [vmem:[#allocation2 + $0x30] sm:$0xff]  }
 0x20c   :  { %v652_v20 = vsel %vm643_vm8, %v630_v13, %v648_v17  ;;  %v4618_v13 = vld [vmem:[#allocation2 + $0x38] sm:$0xff]   ;;  %v1050_v17 = vstv %s3430_s13 }
 0x20d   :  { %687 = vrot.lane.b32.xlu0 %v4898_v18, %s4838_s11  ;;  %v3819_v21 = vpack.c.bf16 %v4898_v18, %v4890_v9  ;;  %v4904_v22 = vadd.f32 %v652_v20, %v468_v19  ;;  %v4620_v20 = vld [vmem:[#allocation2 + $0x28] sm:$0xff]  }
 0x20f   :  { %4062 = vst [vmem:[#allocation2 + $0x8] sm:$0xff] %v3819_v21   ;;  %683 = vrot.lane.b32.xlu1 %v4904_v22, %s4838_s11  ;;  %v3814_v23 = vpack.c.bf16 %v4904_v22, %v4894_v14 }
 0x211   :  { %3815 = vst [vmem:[#allocation2] sm:$0xff] %v3814_v23  }
 0x216   :  { %v4604_v38 = vld [vmem:[#allocation2 + $0x8] sm:$0xff]  }
 0x218   :  { %v4605_v39 = vld [vmem:[#allocation2] sm:$0xff]  }
 0x27b   :  { %v686_v25 = vpop.permute.xlu0 %685 }
 0x27c   :  { %v696_v29 = vmul.f32 %v4910_v26, %v686_v25 }
 0x27d   :  { %v682_v27 = vpop.permute.xlu1 %681 }
 0x27e   :  { %v694_v32 = vmul.f32 %v4910_v26, %v682_v27 }
 0x27f   :  { %v688_v28 = vpop.permute.xlu0 %687 }
 0x280   :  { %v697_v30 = vmul.f32 %v4910_v26, %v688_v28 }
 0x281   :  { %v684_v31 = vpop.permute.xlu1 %683 }
 0x282   :  { %v3829_v33 = vpack.c.bf16 %v697_v30, %v696_v29  ;;  %v695_v34 = vmul.f32 %v4910_v26, %v684_v31  ;;  %v4621_v29 = vld [vmem:[#allocation2 + $0x20] sm:$0xff]  }
 0x284   :  { %4064 = vst [vmem:[#allocation2 + $0x18] sm:$0xff] %v3829_v33   ;;  %v3824_v35 = vpack.c.bf16 %v695_v34, %v694_v32 }
 0x286   :  { %4063 = vst [vmem:[#allocation2 + $0x10] sm:$0xff] %v3824_v35  }
 0x28b   :  { %v4602_v36 = vld [vmem:[#allocation2 + $0x18] sm:$0xff]  }
 0x28c   :  { %4302 = vmatprep.subr.bf16.mxu0 %v4602_v36 }
 0x28d   :  { %v4603_v37 = vld [vmem:[#allocation2 + $0x10] sm:$0xff]   ;;  %4303 = vmatpush3.bf16.msra.mxu0 %v4602_v36 }
 0x28e   :  { %4304 = vmatprep.subr.bf16.mxu0 %v4603_v37 }
 0x291   :  { %4305 = vmatpush3.bf16.msra.mxu0 %v4603_v37 }
 0x292   :  { %4306 = vmatprep.subr.bf16.mxu0 %v4604_v38 }
 0x295   :  { %4307 = vmatpush3.bf16.msra.mxu0 %v4604_v38 }
 0x296   :  { %4308 = vmatprep.subr.bf16.mxu0 %v4605_v39 }
 0x299   :  { %4309 = vmatpush3.bf16.msra.mxu0 %v4605_v39 }
 0x29a   :  { %4334 = vmatprep.subr.bf16.mxu0 %v4618_v13 }
 0x29c   :  { %4311 = vmatmul.mubr.bf16.vlgmr.msra.gmra.mxu0 %v4607_v40 }
 0x29d   :  { %4335 = vmatpush3.bf16.msra.mxu0 %v4618_v13 }
 0x29e   :  { %4336 = vmatprep.subr.bf16.mxu0 %v4619_v15 }
 0x2a1   :  { %4337 = vmatpush3.bf16.msra.mxu0 %v4619_v15 }
 0x2a2   :  { %4338 = vmatprep.subr.bf16.mxu0 %v4620_v20 }
 0x2a5   :  { %4339 = vmatpush3.bf16.msra.mxu0 %v4620_v20 }
 0x2a6   :  { %4340 = vmatprep.subr.bf16.mxu0 %v4621_v29 }
 0x2a9   :  { %4341 = vmatpush3.bf16.msra.mxu0 %v4621_v29 }
 0x35c   :  { %v4312_v45 = vpop.f32.mrf.mxu0 }
 0x35d   :  { %vm849_vm9 = vcmp.gt.f32.partialorder %v4312_v45, 0.0  ;;  %v854_v46 = vmul.f32 %v4312_v45, %v851_v43 }
 0x35e   :  { %v832_v47 = vpop.f32.mrf.mxu0 }
 0x35f   :  { %v852_v49 = vmul.f32 %v851_v43, %v832_v47  ;;  %v858_v50 = vsel %vm849_vm9, %v4312_v45, %v854_v46  ;;  %vm847_vm10 = vcmp.gt.f32.partialorder %v832_v47, 0.0  ;;  %v4956_v46 = vld [vmem:[#allocation10 + $0x9] ss:$0 sm:$0xff] }
 0x360   :  { %884 = vrot.lane.b32.xlu0 %v858_v50, %s4838_s11  ;;  %v4313_v51 = vpop.f32.mrf.mxu0 }
 0x361   :  { %vm850_vm11 = vcmp.gt.f32.partialorder %v4313_v51, 0.0  ;;  %v855_v52 = vmul.f32 %v4313_v51, %v851_v43  ;;  %v856_v55 = vsel %vm847_vm10, %v832_v47, %v852_v49 }
 0x362   :  { %v835_v53 = vpop.f32.mrf.mxu0 }
 0x363   :  { %vm848_vm12 = vcmp.gt.f32.partialorder %v835_v53, 0.0  ;;  %v853_v54 = vmul.f32 %v851_v43, %v835_v53  ;;  %v859_v56 = vsel %vm850_vm11, %v4313_v51, %v855_v52 }
 0x364   :  { %880 = vrot.lane.b32.xlu0 %v856_v55, %s4838_s11  ;;  %886 = vrot.lane.b32.xlu1 %v859_v56, %s4838_s11  ;;  %v3839_v57 = vpack.c.bf16 %v859_v56, %v858_v50 }
 0x365   :  { %v857_v58 = vsel %vm848_vm12, %v835_v53, %v853_v54 }
 0x366   :  { %4065 = vst [vmem:[#allocation2 + $0x8] sm:$0xff] %v3839_v57   ;;  %v3834_v59 = vpack.c.bf16 %v857_v58, %v856_v55 }
 0x368   :  { %882 = vrot.lane.b32.xlu1 %v857_v58, %s4838_s11  ;;  %3835 = vst [vmem:[#allocation2] sm:$0xff] %v3834_v59  }
 0x36d   :  { %v4614_v10 = vld [vmem:[#allocation2 + $0x8] sm:$0xff]  }
 0x36f   :  { %v4615_v11 = vld [vmem:[#allocation2] sm:$0xff]  }
 0x3d2   :  { %v885_v61 = vpop.permute.xlu0 %884 }
 0x3d3   :  { %v895_v63 = vmul.f32 %v4910_v26, %v885_v61  ;;  %v4627_v61 = vld [vmem:[#allocation8 + $0x58] sm:$0xff]  }
 0x3d6   :  { %v887_v62 = vpop.permute.xlu1 %886  ;;  %v881_v1 = vpop.permute.xlu0 %880 }
 0x3d7   :  { %v896_v0 = vmul.f32 %v4910_v26, %v887_v62  ;;  %v893_v4 = vmul.f32 %v4910_v26, %v881_v1  ;;  %v4628_v62 = vld [vmem:[#allocation2 + $0x38] sm:$0xff]   ;;  %v4630_v1 = vld [vmem:[#allocation2 + $0x28] sm:$0xff]  }
 0x3d9   :  { %v3849_v2 = vpack.c.bf16 %v896_v0, %v895_v63  ;;  %v4629_v63 = vld [vmem:[#allocation2 + $0x30] sm:$0xff]   ;;  %v1272_v0 = vstv %s3469_s15 }
 0x3da   :  { %v883_v3 = vpop.permute.xlu1 %882 }
 0x3db   :  { %4067 = vst [vmem:[#allocation2 + $0x18] sm:$0xff] %v3849_v2   ;;  %v894_v5 = vmul.f32 %v4910_v26, %v883_v3 }
 0x3dd   :  { %v3844_v6 = vpack.c.bf16 %v894_v5, %v893_v4  ;;  %v4631_v5 = vld [vmem:[#allocation2 + $0x20] sm:$0xff]  }
 0x3df   :  { %4066 = vst [vmem:[#allocation2 + $0x10] sm:$0xff] %v3844_v6  }
 0x3e2   :  { %v4612_v7 = vld [vmem:[#allocation2 + $0x18] sm:$0xff]  }
 0x3e3   :  { %4322 = vmatprep.subr.bf16.mxu1 %v4612_v7 }
 0x3e4   :  { %4323 = vmatpush3.bf16.msra.mxu1 %v4612_v7 }
 0x3e6   :  { %v4613_v8 = vld [vmem:[#allocation2 + $0x10] sm:$0xff]  }
 0x3e7   :  { %4324 = vmatprep.subr.bf16.mxu1 %v4613_v8 }
 0x3e8   :  { %4325 = vmatpush3.bf16.msra.mxu1 %v4613_v8 }
 0x3e9   :  { %4326 = vmatprep.subr.bf16.mxu1 %v4614_v10 }
 0x3ec   :  { %4327 = vmatpush3.bf16.msra.mxu1 %v4614_v10 }
 0x3ed   :  { %4328 = vmatprep.subr.bf16.mxu1 %v4615_v11 }
 0x3f0   :  { %4329 = vmatpush3.bf16.msra.mxu1 %v4615_v11 }
 0x3f1   :  { %4354 = vmatprep.subr.bf16.mxu1 %v4628_v62 }
 0x3f3   :  { %4331 = vmatmul.mubr.bf16.vlgmr.msra.gmra.mxu1 %v4617_v12 }
 0x3f4   :  { %4355 = vmatpush3.bf16.msra.mxu1 %v4628_v62 }
 0x3f5   :  { %4356 = vmatprep.subr.bf16.mxu1 %v4629_v63 }
 0x3f8   :  { %4357 = vmatpush3.bf16.msra.mxu1 %v4629_v63 }
 0x3f9   :  { %4358 = vmatprep.subr.bf16.mxu1 %v4630_v1 }
 0x3fc   :  { %4359 = vmatpush3.bf16.msra.mxu1 %v4630_v1 }
 0x3fd   :  { %4360 = vmatprep.subr.bf16.mxu1 %v4631_v5 }
 0x400   :  { %4361 = vmatpush3.bf16.msra.mxu1 %v4631_v5 }
 0x4b3   :  { %v4332_v19 = vpop.f32.mrf.mxu1 }
 0x4b4   :  { %vm1048_vm13 = vcmp.gt.f32.partialorder %v4332_v19, 0.0  ;;  %v1053_v21 = vmul.f32 %v4332_v19, %v1050_v17 }
 0x4b5   :  { %v1031_v23 = vpop.f32.mrf.mxu1 }
 0x4b6   :  { %v1057_v24 = vsel %vm1048_vm13, %v4332_v19, %v1053_v21  ;;  %vm1046_vm14 = vcmp.gt.f32.partialorder %v1031_v23, 0.0  ;;  %v1051_v25 = vmul.f32 %v1050_v17, %v1031_v23  ;;  %v4636_v19 = vld [vmem:[#allocation8 + $0x60] sm:$0xff]  }
 0x4b7   :  { %v4333_v27 = vpop.f32.mrf.mxu1  ;;  %v4925_v28 = vadd.f32 %v1057_v24, %v4890_v9  ;;  %4370 = vmatprep.mubr.bf16.mxu1 %v4636_v19 }
 0x4b8   :  { %v1055_v30 = vsel %vm1046_vm14, %v1031_v23, %v1051_v25  ;;  %vm1049_vm15 = vcmp.gt.f32.partialorder %v4333_v27, 0.0  ;;  %v1054_v31 = vmul.f32 %v4333_v27, %v1050_v17 }
 0x4b9   :  { %1106 = vrot.lane.b32.xlu0 %v4925_v28, %s4838_s11  ;;  %v1034_v32 = vpop.f32.mrf.mxu1  ;;  %v4930_v35 = vadd.f32 %v1055_v30, %v4894_v14  ;;  %v4626_v14 = vld [vmem:[#allocation8 + $0x50] sm:$0xff]  }
 0x4ba   :  { %v1058_v33 = vsel %vm1049_vm15, %v4333_v27, %v1054_v31  ;;  %vm1047_vm0 = vcmp.gt.f32.partialorder %v1034_v32, 0.0  ;;  %v1052_v34 = vmul.f32 %v1050_v17, %v1034_v32  ;;  %4350 = vmatprep.mubr.bf16.mxu0 %v4626_v14 }
 0x4bb   :  { %v4933_v36 = vadd.f32 %v1058_v33, %v4898_v18 }
 0x4bc   :  { %v1056_v9 = vsel %vm1047_vm0, %v1034_v32, %v1052_v34 }
 0x4bd   :  { %1102 = vrot.lane.b32.xlu0 %v4930_v35, %s4838_s11  ;;  %1108 = vrot.lane.b32.xlu1 %v4933_v36, %s4838_s11  ;;  %v4940_v37 = vadd.f32 %v1056_v9, %v4904_v22 }
 0x4c1   :  { %1069 = vrot.lane.b32.xlu0 %v4925_v28, %s4839_s14  ;;  %1104 = vrot.lane.b32.xlu1 %v4940_v37, %s4838_s11 }
 0x4c5   :  { %1065 = vrot.lane.b32.xlu0 %v4930_v35, %s4839_s14  ;;  %1071 = vrot.lane.b32.xlu1 %v4933_v36, %s4839_s14 }
 0x4c9   :  { %1067 = vrot.lane.b32.xlu1 %v4940_v37, %s4839_s14 }
 0x52b   :  { %v1107_v18 = vpop.permute.xlu0 %1106 }
 0x52c   :  { %v1117_v39 = vmul.f32 %v4910_v26, %v1107_v18 }
 0x52f   :  { %v1103_v22 = vpop.permute.xlu0 %1102  ;;  %v1109_v38 = vpop.permute.xlu1 %1108 }
 0x530   :  { %v1118_v40 = vmul.f32 %v4910_v26, %v1109_v38  ;;  %v1115_v44 = vmul.f32 %v4910_v26, %v1103_v22 }
 0x532   :  { %v3869_v41 = vpack.c.bf16 %v1118_v40, %v1117_v39 }
 0x533   :  { %v1070_v42 = vpop.permute.xlu0 %1069  ;;  %v1105_v43 = vpop.permute.xlu1 %1104 }
 0x534   :  { %4070 = vst [vmem:[#allocation2 + $0x18] sm:$0xff] %v3869_v41   ;;  %v1116_v45 = vmul.f32 %v4910_v26, %v1105_v43  ;;  %v1080_v49 = vmul.f32 %v4956_v46, %v1070_v42 }
 0x536   :  { %v3864_v47 = vpack.c.bf16 %v1116_v45, %v1115_v44  ;;  %v4637_v45 = vld [vmem:[#allocation8 + $0x68] sm:$0xff]  }
 0x537   :  { %v1072_v48 = vpop.permute.xlu1 %1071  ;;  %v1066_v51 = vpop.permute.xlu0 %1065 }
 0x538   :  { %4069 = vst [vmem:[#allocation2 + $0x10] sm:$0xff] %v3864_v47   ;;  %v1081_v50 = vmul.f32 %v4956_v46, %v1072_v48  ;;  %v1078_v55 = vmul.f32 %v4956_v46, %v1066_v51  ;;  %v4638_v47 = vld [vmem:[#allocation2 + $0x38] sm:$0xff]   ;;  %v1488_v48 = vstv %s3470_s16 }
 0x53a   :  { %v3859_v52 = vpack.c.bf16 %v1081_v50, %v1080_v49  ;;  %v4640_v50 = vld [vmem:[#allocation2 + $0x28] sm:$0xff]  }
 0x53b   :  { %v1068_v53 = vpop.permute.xlu1 %1067  ;;  %v4622_v54 = vld [vmem:[#allocation2 + $0x18] sm:$0xff]  }
 0x53c   :  { %4068 = vst [vmem:[#allocation2 + $0x8] sm:$0xff] %v3859_v52   ;;  %v1079_v56 = vmul.f32 %v4956_v46, %v1068_v53  ;;  %4342 = vmatprep.subr.bf16.mxu0 %v4622_v54 }
 0x53d   :  { %4343 = vmatpush3.bf16.msra.mxu0 %v4622_v54 }
 0x53e   :  { %v3854_v57 = vpack.c.bf16 %v1079_v56, %v1078_v55 }
 0x53f   :  { %v4623_v58 = vld [vmem:[#allocation2 + $0x10] sm:$0xff]  }
 0x540   :  { %3855 = vst [vmem:[#allocation2] sm:$0xff] %v3854_v57   ;;  %4344 = vmatprep.subr.bf16.mxu0 %v4623_v58  ;;  %v4641_v57 = vld [vmem:[#allocation2 + $0x20] sm:$0xff]  }
 0x541   :  { %4345 = vmatpush3.bf16.msra.mxu0 %v4623_v58 }
 0x543   :  { %v4624_v59 = vld [vmem:[#allocation2 + $0x8] sm:$0xff]  }
 0x544   :  { %4346 = vmatprep.subr.bf16.mxu0 %v4624_v59 }
 0x545   :  { %4347 = vmatpush3.bf16.msra.mxu0 %v4624_v59 }
 0x547   :  { %v4625_v60 = vld [vmem:[#allocation2] sm:$0xff]  }
 0x548   :  { %4348 = vmatprep.subr.bf16.mxu0 %v4625_v60 }
 0x549   :  { %4349 = vmatpush3.bf16.msra.mxu0 %v4625_v60 }
 0x54a   :  { %4374 = vmatprep.subr.bf16.mxu0 %v4638_v47 }
 0x54c   :  { %4351 = vmatmul.mubr.bf16.vlgmr.msra.gmra.mxu0 %v4627_v61 }
 0x54d   :  { %4375 = vmatpush3.bf16.msra.mxu0 %v4638_v47 }
 0x60c   :  { %v4352_v2 = vpop.f32.mrf.mxu0 }
 0x60d   :  { %vm1270_vm1 = vcmp.gt.f32.partialorder %v4352_v2, 0.0  ;;  %v1275_v3 = vmul.f32 %v4352_v2, %v1272_v0 }
 0x60e   :  { %v1253_v4 = vpop.f32.mrf.mxu0 }
 0x60f   :  { %v1273_v6 = vmul.f32 %v1272_v0, %v1253_v4  ;;  %v1279_v7 = vsel %vm1270_vm1, %v4352_v2, %v1275_v3  ;;  %vm1268_vm2 = vcmp.gt.f32.partialorder %v1253_v4, 0.0 }
 0x610   :  { %1322 = vrot.lane.b32.xlu0 %v1279_v7, %s4838_s11  ;;  %v4353_v8 = vpop.f32.mrf.mxu0 }
 0x611   :  { %vm1271_vm3 = vcmp.gt.f32.partialorder %v4353_v8, 0.0  ;;  %v1276_v10 = vmul.f32 %v4353_v8, %v1272_v0  ;;  %v1277_v13 = vsel %vm1268_vm2, %v1253_v4, %v1273_v6 }
 0x612   :  { %v1256_v11 = vpop.f32.mrf.mxu0 }
 0x613   :  { %v1274_v12 = vmul.f32 %v1272_v0, %v1256_v11  ;;  %v1280_v15 = vsel %vm1271_vm3, %v4353_v8, %v1276_v10  ;;  %vm1269_vm4 = vcmp.gt.f32.partialorder %v1256_v11, 0.0 }
 0x614   :  { %1318 = vrot.lane.b32.xlu0 %v1277_v13, %s4838_s11  ;;  %1324 = vrot.lane.b32.xlu1 %v1280_v15, %s4838_s11 }
 0x615   :  { %v1278_v17 = vsel %vm1269_vm4, %v1256_v11, %v1274_v12  ;;  %v5012_v12 = vld [vmem:[#allocation10 + $0xa] ss:$0 sm:$0xff] }
 0x618   :  { %1285 = vrot.lane.b32.xlu0 %v1279_v7, %s4839_s14  ;;  %1320 = vrot.lane.b32.xlu1 %v1278_v17, %s4838_s11 }
 0x61c   :  { %1281 = vrot.lane.b32.xlu0 %v1277_v13, %s4839_s14  ;;  %1287 = vrot.lane.b32.xlu1 %v1280_v15, %s4839_s14 }
 0x620   :  { %1283 = vrot.lane.b32.xlu1 %v1278_v17, %s4839_s14 }
 0x682   :  { %v1323_v20 = vpop.permute.xlu0 %1322 }
 0x683   :  { %v1333_v24 = vmul.f32 %v4910_v26, %v1323_v20 }
 0x686   :  { %v1319_v21 = vpop.permute.xlu0 %1318  ;;  %v1325_v23 = vpop.permute.xlu1 %1324 }
 0x687   :  { %v1334_v25 = vmul.f32 %v4910_v26, %v1325_v23  ;;  %v1331_v31 = vmul.f32 %v4910_v26, %v1319_v21 }
 0x689   :  { %v3889_v27 = vpack.c.bf16 %v1334_v25, %v1333_v24 }
 0x68a   :  { %v1286_v29 = vpop.permute.xlu0 %1285  ;;  %v1321_v30 = vpop.permute.xlu1 %1320 }
 0x68b   :  { %4073 = vst [vmem:[#allocation2 + $0x18] sm:$0xff] %v3889_v27   ;;  %v1332_v32 = vmul.f32 %v4910_v26, %v1321_v30  ;;  %v1296_v9 = vmul.f32 %v4956_v46, %v1286_v29 }
 0x68d   :  { %v3884_v33 = vpack.c.bf16 %v1332_v32, %v1331_v31 }
 0x68e   :  { %v1288_v34 = vpop.permute.xlu1 %1287  ;;  %v1282_v18 = vpop.permute.xlu0 %1281 }
 0x68f   :  { %4072 = vst [vmem:[#allocation2 + $0x10] sm:$0xff] %v3884_v33   ;;  %v1297_v14 = vmul.f32 %v4956_v46, %v1288_v34  ;;  %v1294_v40 = vmul.f32 %v4956_v46, %v1282_v18  ;;  %v4647_v33 = vld [vmem:[#allocation8 + $0x78] sm:$0xff]   ;;  %v4648_v34 = vld [vmem:[#allocation2 + $0x38] sm:$0xff]   ;;  %v4650_v18 = vld [vmem:[#allocation2 + $0x28] sm:$0xff]  }
 0x691   :  { %v3879_v22 = vpack.c.bf16 %v1297_v14, %v1296_v9  ;;  %v4649_v9 = vld [vmem:[#allocation2 + $0x30] sm:$0xff]   ;;  %v1710_v14 = vstv %s3511_s20 }
 0x692   :  { %v1284_v38 = vpop.permute.xlu1 %1283  ;;  %v4632_v39 = vld [vmem:[#allocation2 + $0x18] sm:$0xff]  }
 0x693   :  { %4071 = vst [vmem:[#allocation2 + $0x8] sm:$0xff] %v3879_v22   ;;  %v1295_v41 = vmul.f32 %v4956_v46, %v1284_v38  ;;  %4362 = vmatprep.subr.bf16.mxu1 %v4632_v39  ;;  %v4639_v46 = vld [vmem:[#allocation2 + $0x30] sm:$0xff]  }
 0x694   :  { %4363 = vmatpush3.bf16.msra.mxu1 %v4632_v39  ;;  %4376 = vmatprep.subr.bf16.mxu0 %v4639_v46 }
 0x695   :  { %v3874_v42 = vpack.c.bf16 %v1295_v41, %v1294_v40  ;;  %4377 = vmatpush3.bf16.msra.mxu0 %v4639_v46  ;;  %v4651_v40 = vld [vmem:[#allocation2 + $0x20] sm:$0xff]  }
 0x696   :  { %v4633_v26 = vld [vmem:[#allocation2 + $0x10] sm:$0xff]   ;;  %4378 = vmatprep.subr.bf16.mxu0 %v4640_v50 }
 0x697   :  { %3875 = vst [vmem:[#allocation2] sm:$0xff] %v3874_v42   ;;  %4364 = vmatprep.subr.bf16.mxu1 %v4633_v26 }
 0x698   :  { %4365 = vmatpush3.bf16.msra.mxu1 %v4633_v26 }
 0x699   :  { %4379 = vmatpush3.bf16.msra.mxu0 %v4640_v50 }
 0x69a   :  { %v4634_v43 = vld [vmem:[#allocation2 + $0x8] sm:$0xff]   ;;  %4380 = vmatprep.subr.bf16.mxu0 %v4641_v57 }
 0x69b   :  { %4366 = vmatprep.subr.bf16.mxu1 %v4634_v43 }
 0x69c   :  { %4367 = vmatpush3.bf16.msra.mxu1 %v4634_v43 }
 0x69d   :  { %4381 = vmatpush3.bf16.msra.mxu0 %v4641_v57 }
 0x69e   :  { %v4635_v44 = vld [vmem:[#allocation2] sm:$0xff]  }
 0x69f   :  { %4368 = vmatprep.subr.bf16.mxu1 %v4635_v44 }
 0x6a0   :  { %4369 = vmatpush3.bf16.msra.mxu1 %v4635_v44 }
 0x6a1   :  { %4394 = vmatprep.subr.bf16.mxu1 %v4648_v34 }
 0x6a3   :  { %4371 = vmatmul.mubr.bf16.vlgmr.msra.gmra.mxu1 %v4637_v45 }
 0x6a4   :  { %4395 = vmatpush3.bf16.msra.mxu1 %v4648_v34 }
 0x6a5   :  { %4396 = vmatprep.subr.bf16.mxu1 %v4649_v9 }
 0x6a8   :  { %4397 = vmatpush3.bf16.msra.mxu1 %v4649_v9 }
 0x6a9   :  { %4398 = vmatprep.subr.bf16.mxu1 %v4650_v18 }
 0x6ac   :  { %4399 = vmatpush3.bf16.msra.mxu1 %v4650_v18 }
 0x6ad   :  { %4400 = vmatprep.subr.bf16.mxu1 %v4651_v40 }
 0x6b0   :  { %4401 = vmatpush3.bf16.msra.mxu1 %v4651_v40 }
 0x763   :  { %v4372_v49 = vpop.f32.mrf.mxu1 }
 0x764   :  { %vm1486_vm5 = vcmp.gt.f32.partialorder %v4372_v49, 0.0  ;;  %v1491_v51 = vmul.f32 %v4372_v49, %v1488_v48 }
 0x765   :  { %v1469_v52 = vpop.f32.mrf.mxu1 }
 0x766   :  { %v1495_v53 = vsel %vm1486_vm5, %v4372_v49, %v1491_v51  ;;  %vm1484_vm6 = vcmp.gt.f32.partialorder %v1469_v52, 0.0  ;;  %v1489_v54 = vmul.f32 %v1488_v48, %v1469_v52  ;;  %v4656_v49 = vld [vmem:[#allocation8 + $0x80] sm:$0xff]  }
 0x767   :  { %v4373_v55 = vpop.f32.mrf.mxu1  ;;  %v4979_v56 = vadd.f32 %v1495_v53, %v4925_v28  ;;  %4410 = vmatprep.mubr.bf16.mxu1 %v4656_v49 }
 0x768   :  { %v1493_v58 = vsel %vm1484_vm6, %v1469_v52, %v1489_v54  ;;  %vm1487_vm7 = vcmp.gt.f32.partialorder %v4373_v55, 0.0  ;;  %v1492_v59 = vmul.f32 %v4373_v55, %v1488_v48 }
 0x769   :  { %1544 = vrot.lane.b32.xlu0 %v4979_v56, %s4840_s17  ;;  %v1472_v60 = vpop.f32.mrf.mxu1  ;;  %v4984_v63 = vadd.f32 %v1493_v58, %v4930_v35  ;;  %v4646_v35 = vld [vmem:[#allocation8 + $0x70] sm:$0xff]  }
 0x76a   :  { %v1496_v61 = vsel %vm1487_vm7, %v4373_v55, %v1492_v59  ;;  %vm1485_vm8 = vcmp.gt.f32.partialorder %v1472_v60, 0.0  ;;  %v1490_v62 = vmul.f32 %v1488_v48, %v1472_v60  ;;  %4390 = vmatprep.mubr.bf16.mxu0 %v4646_v35 }
 0x76b   :  { %v4987_v28 = vadd.f32 %v1496_v61, %v4933_v36 }
 0x76c   :  { %v1494_v0 = vsel %vm1485_vm8, %v1472_v60, %v1490_v62 }
 0x76d   :  { %1540 = vrot.lane.b32.xlu0 %v4984_v63, %s4840_s17  ;;  %1546 = vrot.lane.b32.xlu1 %v4987_v28, %s4840_s17  ;;  %v4994_v1 = vadd.f32 %v1494_v0, %v4940_v37  ;;  %v5006_v37 = vld [vmem:[#allocation10 + $0xb] ss:$0 sm:$0xff] }
 0x771   :  { %1507 = vrot.lane.b32.xlu0 %v4979_v56, %s4841_s18  ;;  %1542 = vrot.lane.b32.xlu1 %v4994_v1, %s4840_s17 }
 0x775   :  { %1503 = vrot.lane.b32.xlu0 %v4984_v63, %s4841_s18  ;;  %1509 = vrot.lane.b32.xlu1 %v4987_v28, %s4841_s18 }
 0x779   :  { %1505 = vrot.lane.b32.xlu1 %v4994_v1, %s4841_s18 }
 0x7db   :  { %v1545_v36 = vpop.permute.xlu0 %1544 }
 0x7dc   :  { %v1555_v4 = vmul.f32 %v5006_v37, %v1545_v36 }
 0x7df   :  { %v1541_v2 = vpop.permute.xlu0 %1540  ;;  %v1547_v3 = vpop.permute.xlu1 %1546 }
 0x7e0   :  { %v1556_v5 = vmul.f32 %v5006_v37, %v1547_v3  ;;  %v1553_v10 = vmul.f32 %v5006_v37, %v1541_v2 }
 0x7e2   :  { %v3909_v6 = vpack.c.bf16 %v1556_v5, %v1555_v4 }
 0x7e3   :  { %v1508_v7 = vpop.permute.xlu0 %1507  ;;  %v1543_v8 = vpop.permute.xlu1 %1542 }
 0x7e4   :  { %4076 = vst [vmem:[#allocation2 + $0x18] sm:$0xff] %v3909_v6   ;;  %v1554_v11 = vmul.f32 %v5006_v37, %v1543_v8  ;;  %v1518_v17 = vmul.f32 %v5012_v12, %v1508_v7 }
 0x7e6   :  { %v3904_v13 = vpack.c.bf16 %v1554_v11, %v1553_v10  ;;  %v4657_v11 = vld [vmem:[#allocation8 + $0x88] sm:$0xff]  }
 0x7e7   :  { %v1510_v15 = vpop.permute.xlu1 %1509  ;;  %v1504_v20 = vpop.permute.xlu0 %1503 }
 0x7e8   :  { %4075 = vst [vmem:[#allocation2 + $0x10] sm:$0xff] %v3904_v13   ;;  %v1519_v19 = vmul.f32 %v5012_v12, %v1510_v15  ;;  %v1516_v25 = vmul.f32 %v5012_v12, %v1504_v20  ;;  %v4658_v13 = vld [vmem:[#allocation2 + $0x38] sm:$0xff]   ;;  %v1926_v15 = vstv %s3512_s21 }
 0x7ea   :  { %v3899_v21 = vpack.c.bf16 %v1519_v19, %v1518_v17  ;;  %v4660_v19 = vld [vmem:[#allocation2 + $0x28] sm:$0xff]  }
 0x7eb   :  { %v1506_v23 = vpop.permute.xlu1 %1505  ;;  %v4642_v24 = vld [vmem:[#allocation2 + $0x18] sm:$0xff]  }
 0x7ec   :  { %4074 = vst [vmem:[#allocation2 + $0x8] sm:$0xff] %v3899_v21   ;;  %v1517_v27 = vmul.f32 %v5012_v12, %v1506_v23  ;;  %4382 = vmatprep.subr.bf16.mxu0 %v4642_v24 }
 0x7ed   :  { %4383 = vmatpush3.bf16.msra.mxu0 %v4642_v24 }
 0x7ee   :  { %v3894_v29 = vpack.c.bf16 %v1517_v27, %v1516_v25 }
 0x7ef   :  { %v4643_v30 = vld [vmem:[#allocation2 + $0x10] sm:$0xff]  }
 0x7f0   :  { %3895 = vst [vmem:[#allocation2] sm:$0xff] %v3894_v29   ;;  %4384 = vmatprep.subr.bf16.mxu0 %v4643_v30  ;;  %v4661_v29 = vld [vmem:[#allocation2 + $0x20] sm:$0xff]  }
 0x7f1   :  { %4385 = vmatpush3.bf16.msra.mxu0 %v4643_v30 }
 0x7f3   :  { %v4644_v31 = vld [vmem:[#allocation2 + $0x8] sm:$0xff]  }
 0x7f4   :  { %4386 = vmatprep.subr.bf16.mxu0 %v4644_v31 }
 0x7f5   :  { %4387 = vmatpush3.bf16.msra.mxu0 %v4644_v31 }
 0x7f7   :  { %v4645_v32 = vld [vmem:[#allocation2] sm:$0xff]  }
 0x7f8   :  { %4388 = vmatprep.subr.bf16.mxu0 %v4645_v32 }
 0x7f9   :  { %4389 = vmatpush3.bf16.msra.mxu0 %v4645_v32 }
 0x7fa   :  { %4414 = vmatprep.subr.bf16.mxu0 %v4658_v13 }
 0x7fc   :  { %4391 = vmatmul.mubr.bf16.vlgmr.msra.gmra.mxu0 %v4647_v33 }
 0x7fd   :  { %4415 = vmatpush3.bf16.msra.mxu0 %v4658_v13 }
 0x8bc   :  { %v4392_v22 = vpop.f32.mrf.mxu0 }
 0x8bd   :  { %vm1708_vm9 = vcmp.gt.f32.partialorder %v4392_v22, 0.0  ;;  %v1713_v38 = vmul.f32 %v4392_v22, %v1710_v14 }
 0x8be   :  { %v1691_v39 = vpop.f32.mrf.mxu0 }
 0x8bf   :  { %v1711_v41 = vmul.f32 %v1710_v14, %v1691_v39  ;;  %v1717_v42 = vsel %vm1708_vm9, %v4392_v22, %v1713_v38  ;;  %vm1706_vm10 = vcmp.gt.f32.partialorder %v1691_v39, 0.0 }
 0x8c0   :  { %1760 = vrot.lane.b32.xlu0 %v1717_v42, %s4840_s17  ;;  %v4393_v26 = vpop.f32.mrf.mxu0 }
 0x8c1   :  { %vm1709_vm11 = vcmp.gt.f32.partialorder %v4393_v26, 0.0  ;;  %v1714_v43 = vmul.f32 %v4393_v26, %v1710_v14  ;;  %v1715_v47 = vsel %vm1706_vm10, %v1691_v39, %v1711_v41 }
 0x8c2   :  { %v1694_v44 = vpop.f32.mrf.mxu0 }
 0x8c3   :  { %v1712_v45 = vmul.f32 %v1710_v14, %v1694_v44  ;;  %v1718_v46 = vsel %vm1709_vm11, %v4393_v26, %v1714_v43  ;;  %vm1707_vm12 = vcmp.gt.f32.partialorder %v1694_v44, 0.0 }
 0x8c4   :  { %1756 = vrot.lane.b32.xlu0 %v1715_v47, %s4840_s17  ;;  %1762 = vrot.lane.b32.xlu1 %v1718_v46, %s4840_s17 }
 0x8c5   :  { %v1716_v48 = vsel %vm1707_vm12, %v1694_v44, %v1712_v45  ;;  %v5068_v45 = vld [vmem:[#allocation10 + $0xc] ss:$0 sm:$0xff] }
 0x8c8   :  { %1723 = vrot.lane.b32.xlu0 %v1717_v42, %s4841_s18  ;;  %1758 = vrot.lane.b32.xlu1 %v1716_v48, %s4840_s17 }
 0x8cc   :  { %1719 = vrot.lane.b32.xlu0 %v1715_v47, %s4841_s18  ;;  %1725 = vrot.lane.b32.xlu1 %v1718_v46, %s4841_s18 }
 0x8d0   :  { %1721 = vrot.lane.b32.xlu1 %v1716_v48, %s4841_s18 }
 0x932   :  { %v1761_v50 = vpop.permute.xlu0 %1760 }
 0x933   :  { %v1771_v53 = vmul.f32 %v5006_v37, %v1761_v50 }
 0x936   :  { %v1757_v51 = vpop.permute.xlu0 %1756  ;;  %v1763_v52 = vpop.permute.xlu1 %1762 }
 0x937   :  { %v1772_v54 = vmul.f32 %v5006_v37, %v1763_v52  ;;  %v1769_v59 = vmul.f32 %v5006_v37, %v1757_v51 }
 0x939   :  { %v3929_v55 = vpack.c.bf16 %v1772_v54, %v1771_v53 }
 0x93a   :  { %v1724_v57 = vpop.permute.xlu0 %1723  ;;  %v1759_v58 = vpop.permute.xlu1 %1758 }
 0x93b   :  { %4079 = vst [vmem:[#allocation2 + $0x18] sm:$0xff] %v3929_v55   ;;  %v1770_v60 = vmul.f32 %v5006_v37, %v1759_v58  ;;  %v1734_v0 = vmul.f32 %v5012_v12, %v1724_v57 }
 0x93d   :  { %v3924_v61 = vpack.c.bf16 %v1770_v60, %v1769_v59 }
 0x93e   :  { %v1726_v62 = vpop.permute.xlu1 %1725  ;;  %v1720_v36 = vpop.permute.xlu0 %1719 }
 0x93f   :  { %4078 = vst [vmem:[#allocation2 + $0x10] sm:$0xff] %v3924_v61   ;;  %v1735_v35 = vmul.f32 %v5012_v12, %v1726_v62  ;;  %v1732_v5 = vmul.f32 %v5012_v12, %v1720_v36  ;;  %v4667_v61 = vld [vmem:[#allocation8 + $0x98] sm:$0xff]   ;;  %v4668_v62 = vld [vmem:[#allocation2 + $0x38] sm:$0xff]   ;;  %v4670_v36 = vld [vmem:[#allocation2 + $0x28] sm:$0xff]  }
 0x941   :  { %v3919_v2 = vpack.c.bf16 %v1735_v35, %v1734_v0  ;;  %v4669_v0 = vld [vmem:[#allocation2 + $0x30] sm:$0xff]   ;;  %v2148_v35 = vstv %s3553_s23 }
 0x942   :  { %v1722_v3 = vpop.permute.xlu1 %1721  ;;  %v4652_v4 = vld [vmem:[#allocation2 + $0x18] sm:$0xff]  }
 0x943   :  { %4077 = vst [vmem:[#allocation2 + $0x8] sm:$0xff] %v3919_v2   ;;  %v1733_v6 = vmul.f32 %v5012_v12, %v1722_v3  ;;  %4402 = vmatprep.subr.bf16.mxu1 %v4652_v4  ;;  %v4659_v12 = vld [vmem:[#allocation2 + $0x30] sm:$0xff]  }
 0x944   :  { %4403 = vmatpush3.bf16.msra.mxu1 %v4652_v4  ;;  %4416 = vmatprep.subr.bf16.mxu0 %v4659_v12 }
 0x945   :  { %v3914_v7 = vpack.c.bf16 %v1733_v6, %v1732_v5  ;;  %4417 = vmatpush3.bf16.msra.mxu0 %v4659_v12  ;;  %v4671_v5 = vld [vmem:[#allocation2 + $0x20] sm:$0xff]  }
 0x946   :  { %v4653_v37 = vld [vmem:[#allocation2 + $0x10] sm:$0xff]   ;;  %4418 = vmatprep.subr.bf16.mxu0 %v4660_v19 }
 0x947   :  { %3915 = vst [vmem:[#allocation2] sm:$0xff] %v3914_v7   ;;  %4404 = vmatprep.subr.bf16.mxu1 %v4653_v37 }
 0x948   :  { %4405 = vmatpush3.bf16.msra.mxu1 %v4653_v37 }
 0x949   :  { %4419 = vmatpush3.bf16.msra.mxu0 %v4660_v19 }
 0x94a   :  { %v4654_v8 = vld [vmem:[#allocation2 + $0x8] sm:$0xff]   ;;  %4420 = vmatprep.subr.bf16.mxu0 %v4661_v29 }
 0x94b   :  { %4406 = vmatprep.subr.bf16.mxu1 %v4654_v8 }
 0x94c   :  { %4407 = vmatpush3.bf16.msra.mxu1 %v4654_v8 }
 0x94d   :  { %4421 = vmatpush3.bf16.msra.mxu0 %v4661_v29 }
 0x94e   :  { %v4655_v10 = vld [vmem:[#allocation2] sm:$0xff]  }
 0x94f   :  { %4408 = vmatprep.subr.bf16.mxu1 %v4655_v10 }
 0x950   :  { %4409 = vmatpush3.bf16.msra.mxu1 %v4655_v10 }
 0x951   :  { %4434 = vmatprep.subr.bf16.mxu1 %v4668_v62 }
 0x953   :  { %4411 = vmatmul.mubr.bf16.vlgmr.msra.gmra.mxu1 %v4657_v11 }
 0x954   :  { %4435 = vmatpush3.bf16.msra.mxu1 %v4668_v62 }
 0x955   :  { %4436 = vmatprep.subr.bf16.mxu1 %v4669_v0 }
 0x958   :  { %4437 = vmatpush3.bf16.msra.mxu1 %v4669_v0 }
 0x959   :  { %4438 = vmatprep.subr.bf16.mxu1 %v4670_v36 }
 0x95c   :  { %4439 = vmatpush3.bf16.msra.mxu1 %v4670_v36 }
 0x95d   :  { %4440 = vmatprep.subr.bf16.mxu1 %v4671_v5 }
 0x960   :  { %4441 = vmatpush3.bf16.msra.mxu1 %v4671_v5 }
 0xa13   :  { %v4412_v17 = vpop.f32.mrf.mxu1 }
 0xa14   :  { %vm1924_vm13 = vcmp.gt.f32.partialorder %v4412_v17, 0.0  ;;  %v1929_v20 = vmul.f32 %v4412_v17, %v1926_v15 }
 0xa15   :  { %v1907_v21 = vpop.f32.mrf.mxu1 }
 0xa16   :  { %v1933_v23 = vsel %vm1924_vm13, %v4412_v17, %v1929_v20  ;;  %vm1922_vm14 = vcmp.gt.f32.partialorder %v1907_v21, 0.0  ;;  %v1927_v24 = vmul.f32 %v1926_v15, %v1907_v21  ;;  %v4676_v17 = vld [vmem:[#allocation8 + $0xa0] sm:$0xff]  }
 0xa17   :  { %v4413_v25 = vpop.f32.mrf.mxu1  ;;  %v5035_v27 = vadd.f32 %v1933_v23, %v4979_v56  ;;  %4450 = vmatprep.mubr.bf16.mxu1 %v4676_v17 }
 0xa18   :  { %v1931_v30 = vsel %vm1922_vm14, %v1907_v21, %v1927_v24  ;;  %vm1925_vm15 = vcmp.gt.f32.partialorder %v4413_v25, 0.0  ;;  %v1930_v31 = vmul.f32 %v4413_v25, %v1926_v15 }
 0xa19   :  { %1982 = vrot.lane.b32.xlu0 %v5035_v27, %s4842_s22  ;;  %v1910_v32 = vpop.f32.mrf.mxu1  ;;  %v5040_v9 = vadd.f32 %v1931_v30, %v4984_v63  ;;  %v4666_v63 = vld [vmem:[#allocation8 + $0x90] sm:$0xff]  }
 0xa1a   :  { %v1934_v33 = vsel %vm1925_vm15, %v4413_v25, %v1930_v31  ;;  %vm1923_vm0 = vcmp.gt.f32.partialorder %v1910_v32, 0.0  ;;  %v1928_v34 = vmul.f32 %v1926_v15, %v1910_v32  ;;  %4430 = vmatprep.mubr.bf16.mxu0 %v4666_v63 }
 0xa1b   :  { %v5043_v56 = vadd.f32 %v1934_v33, %v4987_v28 }
 0xa1c   :  { %v1932_v14 = vsel %vm1923_vm0, %v1910_v32, %v1928_v34 }
 0xa1d   :  { %1978 = vrot.lane.b32.xlu0 %v5040_v9, %s4842_s22  ;;  %1984 = vrot.lane.b32.xlu1 %v5043_v56, %s4842_s22  ;;  %v5050_v18 = vadd.f32 %v1932_v14, %v4994_v1  ;;  %v5062_v1 = vld [vmem:[#allocation10 + $0xd] ss:$0 sm:$0xff] }
 0xa21   :  { %1945 = vrot.lane.b32.xlu0 %v5035_v27, %s4828_s19  ;;  %1980 = vrot.lane.b32.xlu1 %v5050_v18, %s4842_s22 }
 0xa25   :  { %1941 = vrot.lane.b32.xlu0 %v5040_v9, %s4828_s19  ;;  %1947 = vrot.lane.b32.xlu1 %v5043_v56, %s4828_s19 }
 0xa29   :  { %1943 = vrot.lane.b32.xlu1 %v5050_v18, %s4828_s19 }
 0xa8b   :  { %v1983_v28 = vpop.permute.xlu0 %1982 }
 0xa8c   :  { %v1993_v39 = vmul.f32 %v5062_v1, %v1983_v28 }
 0xa8f   :  { %v1979_v22 = vpop.permute.xlu0 %1978  ;;  %v1985_v38 = vpop.permute.xlu1 %1984 }
 0xa90   :  { %v1994_v40 = vmul.f32 %v5062_v1, %v1985_v38  ;;  %v1991_v43 = vmul.f32 %v5062_v1, %v1979_v22 }
 0xa92   :  { %v3949_v41 = vpack.c.bf16 %v1994_v40, %v1993_v39 }
 0xa93   :  { %v1946_v42 = vpop.permute.xlu0 %1945  ;;  %v1981_v26 = vpop.permute.xlu1 %1980 }
 0xa94   :  { %4082 = vst [vmem:[#allocation2 + $0x18] sm:$0xff] %v3949_v41   ;;  %v1992_v44 = vmul.f32 %v5062_v1, %v1981_v26  ;;  %v1956_v48 = vmul.f32 %v5068_v45, %v1946_v42 }
 0xa96   :  { %v3944_v47 = vpack.c.bf16 %v1992_v44, %v1991_v43  ;;  %v4677_v44 = vld [vmem:[#allocation8 + $0xa8] sm:$0xff]  }
 0xa97   :  { %v1948_v46 = vpop.permute.xlu1 %1947  ;;  %v1942_v50 = vpop.permute.xlu0 %1941 }
 0xa98   :  { %4081 = vst [vmem:[#allocation2 + $0x10] sm:$0xff] %v3944_v47   ;;  %v1957_v49 = vmul.f32 %v5068_v45, %v1948_v46  ;;  %v1954_v54 = vmul.f32 %v5068_v45, %v1942_v50  ;;  %v4678_v47 = vld [vmem:[#allocation2 + $0x38] sm:$0xff]  }
 0xa9a   :  { %v3939_v51 = vpack.c.bf16 %v1957_v49, %v1956_v48  ;;  %v4680_v49 = vld [vmem:[#allocation2 + $0x28] sm:$0xff]  }
 0xa9b   :  { %v1944_v52 = vpop.permute.xlu1 %1943  ;;  %v4662_v53 = vld [vmem:[#allocation2 + $0x18] sm:$0xff]  }
 0xa9c   :  { %4080 = vst [vmem:[#allocation2 + $0x8] sm:$0xff] %v3939_v51   ;;  %v1955_v55 = vmul.f32 %v5068_v45, %v1944_v52  ;;  %4422 = vmatprep.subr.bf16.mxu0 %v4662_v53 }
 0xa9d   :  { %4423 = vmatpush3.bf16.msra.mxu0 %v4662_v53 }
 0xa9e   :  { %v3934_v57 = vpack.c.bf16 %v1955_v55, %v1954_v54 }
 0xa9f   :  { %v4663_v58 = vld [vmem:[#allocation2 + $0x10] sm:$0xff]  }
 0xaa0   :  { %3935 = vst [vmem:[#allocation2] sm:$0xff] %v3934_v57   ;;  %4424 = vmatprep.subr.bf16.mxu0 %v4663_v58  ;;  %v4681_v57 = vld [vmem:[#allocation2 + $0x20] sm:$0xff]  }
 0xaa1   :  { %4425 = vmatpush3.bf16.msra.mxu0 %v4663_v58 }
 0xaa3   :  { %v4664_v59 = vld [vmem:[#allocation2 + $0x8] sm:$0xff]  }
 0xaa4   :  { %4426 = vmatprep.subr.bf16.mxu0 %v4664_v59 }
 0xaa5   :  { %4427 = vmatpush3.bf16.msra.mxu0 %v4664_v59 }
 0xaa7   :  { %v4665_v60 = vld [vmem:[#allocation2] sm:$0xff]  }
 0xaa8   :  { %4428 = vmatprep.subr.bf16.mxu0 %v4665_v60 }
 0xaa9   :  { %4429 = vmatpush3.bf16.msra.mxu0 %v4665_v60 }
 0xaaa   :  { %4454 = vmatprep.subr.bf16.mxu0 %v4678_v47 }
 0xaac   :  { %4431 = vmatmul.mubr.bf16.vlgmr.msra.gmra.mxu0 %v4667_v61 }
 0xaad   :  { %4455 = vmatpush3.bf16.msra.mxu0 %v4678_v47 }
 0xb6c   :  { %v4432_v2 = vpop.f32.mrf.mxu0 }
 0xb6d   :  { %vm2146_vm1 = vcmp.gt.f32.partialorder %v4432_v2, 0.0  ;;  %v2151_v3 = vmul.f32 %v4432_v2, %v2148_v35 }
 0xb6e   :  { %v2129_v4 = vpop.f32.mrf.mxu0 }
 0xb6f   :  { %v2149_v6 = vmul.f32 %v2148_v35, %v2129_v4  ;;  %v2155_v7 = vsel %vm2146_vm1, %v4432_v2, %v2151_v3  ;;  %vm2144_vm2 = vcmp.gt.f32.partialorder %v2129_v4, 0.0 }
 0xb70   :  { %2198 = vrot.lane.b32.xlu0 %v2155_v7, %s4842_s22  ;;  %v4433_v37 = vpop.f32.mrf.mxu0 }
 0xb71   :  { %vm2147_vm3 = vcmp.gt.f32.partialorder %v4433_v37, 0.0  ;;  %v2152_v8 = vmul.f32 %v4433_v37, %v2148_v35  ;;  %v2153_v13 = vsel %vm2144_vm2, %v2129_v4, %v2149_v6 }
 0xb72   :  { %v2132_v10 = vpop.f32.mrf.mxu0 }
 0xb73   :  { %v2150_v11 = vmul.f32 %v2148_v35, %v2132_v10  ;;  %v2156_v12 = vsel %vm2147_vm3, %v4433_v37, %v2152_v8  ;;  %vm2145_vm4 = vcmp.gt.f32.partialorder %v2132_v10, 0.0 }
 0xb74   :  { %2194 = vrot.lane.b32.xlu0 %v2153_v13, %s4842_s22  ;;  %2200 = vrot.lane.b32.xlu1 %v2156_v12, %s4842_s22 }
 0xb75   :  { %v2154_v15 = vsel %vm2145_vm4, %v2132_v10, %v2150_v11  ;;  %v5124_v11 = vld [vmem:[#allocation10 + $0xe] ss:$0 sm:$0xff] }
 0xb78   :  { %2161 = vrot.lane.b32.xlu0 %v2155_v7, %s4828_s19  ;;  %2196 = vrot.lane.b32.xlu1 %v2154_v15, %s4842_s22 }
 0xb7c   :  { %2157 = vrot.lane.b32.xlu0 %v2153_v13, %s4828_s19  ;;  %2163 = vrot.lane.b32.xlu1 %v2156_v12, %s4828_s19 }
 0xb80   :  { %2159 = vrot.lane.b32.xlu1 %v2154_v15, %s4828_s19  ;;  %s3554_s19 = sld [smem:[#allocation7 + $0x9]] }
 0xb86   :  { %v2364_v46 = vstv %s3554_s19 }
 0xbe2   :  { %v2199_v19 = vpop.permute.xlu0 %2198 }
 0xbe3   :  { %v2209_v23 = vmul.f32 %v5062_v1, %v2199_v19 }
 0xbe6   :  { %v2195_v20 = vpop.permute.xlu0 %2194  ;;  %v2201_v21 = vpop.permute.xlu1 %2200 }
 0xbe7   :  { %v2210_v24 = vmul.f32 %v5062_v1, %v2201_v21  ;;  %v2207_v31 = vmul.f32 %v5062_v1, %v2195_v20 }
 0xbe9   :  { %v3969_v25 = vpack.c.bf16 %v2210_v24, %v2209_v23 }
 0xbea   :  { %v2162_v29 = vpop.permute.xlu0 %2161  ;;  %v2197_v30 = vpop.permute.xlu1 %2196 }
 0xbeb   :  { %4085 = vst [vmem:[#allocation2 + $0x18] sm:$0xff] %v3969_v25   ;;  %v2208_v32 = vmul.f32 %v5062_v1, %v2197_v30  ;;  %v2172_v14 = vmul.f32 %v5068_v45, %v2162_v29 }
 0xbed   :  { %v3964_v33 = vpack.c.bf16 %v2208_v32, %v2207_v31 }
 0xbee   :  { %v2164_v34 = vpop.permute.xlu1 %2163  ;;  %v2158_v28 = vpop.permute.xlu0 %2157 }
 0xbef   :  { %4084 = vst [vmem:[#allocation2 + $0x10] sm:$0xff] %v3964_v33   ;;  %v2173_v63 = vmul.f32 %v5068_v45, %v2164_v34  ;;  %v2170_v40 = vmul.f32 %v5068_v45, %v2158_v28  ;;  %v4687_v33 = vld [vmem:[#allocation8 + $0xb8] sm:$0xff]   ;;  %v4688_v34 = vld [vmem:[#allocation2 + $0x38] sm:$0xff]   ;;  %v4690_v28 = vld [vmem:[#allocation2 + $0x28] sm:$0xff]  }
 0xbf1   :  { %v3959_v22 = vpack.c.bf16 %v2173_v63, %v2172_v14  ;;  %v4689_v14 = vld [vmem:[#allocation2 + $0x30] sm:$0xff]   ;;  %v2586_v63 = vstv %s3595_s25 }
 0xbf2   :  { %v2160_v38 = vpop.permute.xlu1 %2159  ;;  %v4672_v39 = vld [vmem:[#allocation2 + $0x18] sm:$0xff]  }
 0xbf3   :  { %4083 = vst [vmem:[#allocation2 + $0x8] sm:$0xff] %v3959_v22   ;;  %v2171_v41 = vmul.f32 %v5068_v45, %v2160_v38  ;;  %4442 = vmatprep.subr.bf16.mxu1 %v4672_v39  ;;  %v4679_v45 = vld [vmem:[#allocation2 + $0x30] sm:$0xff]  }
 0xbf4   :  { %4443 = vmatpush3.bf16.msra.mxu1 %v4672_v39  ;;  %4456 = vmatprep.subr.bf16.mxu0 %v4679_v45 }
 0xbf5   :  { %v3954_v42 = vpack.c.bf16 %v2171_v41, %v2170_v40  ;;  %4457 = vmatpush3.bf16.msra.mxu0 %v4679_v45  ;;  %v4691_v40 = vld [vmem:[#allocation2 + $0x20] sm:$0xff]  }
 0xbf6   :  { %v4673_v1 = vld [vmem:[#allocation2 + $0x10] sm:$0xff]   ;;  %4458 = vmatprep.subr.bf16.mxu0 %v4680_v49 }
 0xbf7   :  { %3955 = vst [vmem:[#allocation2] sm:$0xff] %v3954_v42   ;;  %4444 = vmatprep.subr.bf16.mxu1 %v4673_v1 }
 0xbf8   :  { %4445 = vmatpush3.bf16.msra.mxu1 %v4673_v1 }
 0xbf9   :  { %4459 = vmatpush3.bf16.msra.mxu0 %v4680_v49 }
 0xbfa   :  { %v4674_v26 = vld [vmem:[#allocation2 + $0x8] sm:$0xff]   ;;  %4460 = vmatprep.subr.bf16.mxu0 %v4681_v57 }
 0xbfb   :  { %4446 = vmatprep.subr.bf16.mxu1 %v4674_v26 }
 0xbfc   :  { %4447 = vmatpush3.bf16.msra.mxu1 %v4674_v26 }
 0xbfd   :  { %4461 = vmatpush3.bf16.msra.mxu0 %v4681_v57 }
 0xbfe   :  { %v4675_v43 = vld [vmem:[#allocation2] sm:$0xff]  }
 0xbff   :  { %4448 = vmatprep.subr.bf16.mxu1 %v4675_v43 }
 0xc00   :  { %4449 = vmatpush3.bf16.msra.mxu1 %v4675_v43 }
 0xc01   :  { %4474 = vmatprep.subr.bf16.mxu1 %v4688_v34 }
 0xc03   :  { %4451 = vmatmul.mubr.bf16.vlgmr.msra.gmra.mxu1 %v4677_v44 }
 0xc04   :  { %4475 = vmatpush3.bf16.msra.mxu1 %v4688_v34 }
 0xc05   :  { %4476 = vmatprep.subr.bf16.mxu1 %v4689_v14 }
 0xc08   :  { %4477 = vmatpush3.bf16.msra.mxu1 %v4689_v14 }
 0xc09   :  { %4478 = vmatprep.subr.bf16.mxu1 %v4690_v28 }
 0xc0c   :  { %4479 = vmatpush3.bf16.msra.mxu1 %v4690_v28 }
 0xc0d   :  { %4480 = vmatprep.subr.bf16.mxu1 %v4691_v40 }
 0xc10   :  { %4481 = vmatpush3.bf16.msra.mxu1 %v4691_v40 }
 0xcc3   :  { %v4452_v48 = vpop.f32.mrf.mxu1 }
 0xcc4   :  { %vm2362_vm5 = vcmp.gt.f32.partialorder %v4452_v48, 0.0  ;;  %v2367_v50 = vmul.f32 %v4452_v48, %v2364_v46 }
 0xcc5   :  { %v2345_v51 = vpop.f32.mrf.mxu1 }
 0xcc6   :  { %v2371_v52 = vsel %vm2362_vm5, %v4452_v48, %v2367_v50  ;;  %vm2360_vm6 = vcmp.gt.f32.partialorder %v2345_v51, 0.0  ;;  %v2365_v53 = vmul.f32 %v2364_v46, %v2345_v51  ;;  %v4696_v48 = vld [vmem:[#allocation8 + $0xc0] sm:$0xff]   ;;  %vm4846_vm5 = vmmov 0  }
 0xcc7   :  { %v4453_v54 = vpop.f32.mrf.mxu1  ;;  %v5091_v55 = vadd.f32 %v2371_v52, %v5035_v27  ;;  %4490 = vmatprep.mubr.bf16.mxu1 %v4696_v48 }
 0xcc8   :  { %v2369_v58 = vsel %vm2360_vm6, %v2345_v51, %v2365_v53  ;;  %vm2363_vm7 = vcmp.gt.f32.partialorder %v4453_v54, 0.0  ;;  %v2368_v59 = vmul.f32 %v4453_v54, %v2364_v46 }
 0xcc9   :  { %2420 = vrot.lane.b32.xlu0 %v5091_v55, %s4843_s24  ;;  %v2348_v60 = vpop.f32.mrf.mxu1  ;;  %v5096_v0 = vadd.f32 %v2369_v58, %v5040_v9  ;;  %v4686_v9 = vld [vmem:[#allocation8 + $0xb0] sm:$0xff]  }
 0xcca   :  { %v2372_v61 = vsel %vm2363_vm7, %v4453_v54, %v2368_v59  ;;  %vm2361_vm8 = vcmp.gt.f32.partialorder %v2348_v60, 0.0  ;;  %v2366_v62 = vmul.f32 %v2364_v46, %v2348_v60  ;;  %4470 = vmatprep.mubr.bf16.mxu0 %v4686_v9 }
 0xccb   :  { %v5099_v27 = vadd.f32 %v2372_v61, %v5043_v56 }
 0xccc   :  { %v2370_v35 = vsel %vm2361_vm8, %v2348_v60, %v2366_v62 }
 0xccd   :  { %2416 = vrot.lane.b32.xlu0 %v5096_v0, %s4843_s24  ;;  %2422 = vrot.lane.b32.xlu1 %v5099_v27, %s4843_s24  ;;  %v5106_v36 = vadd.f32 %v2370_v35, %v5050_v18  ;;  %v5118_v18 = vld [vmem:[#allocation10 + $0xf] ss:$0 sm:$0xff] }
 0xcd1   :  { %2383 = vrot.lane.b32.xlu0 %v5091_v55, %s4833_s7  ;;  %2418 = vrot.lane.b32.xlu1 %v5106_v36, %s4843_s24 }
 0xcd5   :  { %2379 = vrot.lane.b32.xlu0 %v5096_v0, %s4833_s7  ;;  %2385 = vrot.lane.b32.xlu1 %v5099_v27, %s4833_s7 }
 0xcd9   :  { %2381 = vrot.lane.b32.xlu1 %v5106_v36, %s4833_s7 }
 0xd3b   :  { %v2421_v56 = vpop.permute.xlu0 %2420 }
 0xd3c   :  { %v2431_v4 = vmul.f32 %v5118_v18, %v2421_v56 }
 0xd3f   :  { %v2417_v2 = vpop.permute.xlu0 %2416  ;;  %v2423_v3 = vpop.permute.xlu1 %2422 }
 0xd40   :  { %v2432_v5 = vmul.f32 %v5118_v18, %v2423_v3  ;;  %v2429_v8 = vmul.f32 %v5118_v18, %v2417_v2 }
 0xd42   :  { %v3989_v6 = vpack.c.bf16 %v2432_v5, %v2431_v4 }
 0xd43   :  { %v2384_v7 = vpop.permute.xlu0 %2383  ;;  %v2419_v37 = vpop.permute.xlu1 %2418 }
 0xd44   :  { %4088 = vst [vmem:[#allocation2 + $0x18] sm:$0xff] %v3989_v6   ;;  %v2430_v10 = vmul.f32 %v5118_v18, %v2419_v37  ;;  %v2394_v15 = vmul.f32 %v5124_v11, %v2384_v7 }
 0xd46   :  { %v3984_v13 = vpack.c.bf16 %v2430_v10, %v2429_v8  ;;  %v4697_v10 = vld [vmem:[#allocation8 + $0xc8] sm:$0xff]  }
 0xd47   :  { %v2386_v12 = vpop.permute.xlu1 %2385  ;;  %v2380_v19 = vpop.permute.xlu0 %2379 }
 0xd48   :  { %4087 = vst [vmem:[#allocation2 + $0x10] sm:$0xff] %v3984_v13   ;;  %v2395_v17 = vmul.f32 %v5124_v11, %v2386_v12  ;;  %v2392_v24 = vmul.f32 %v5124_v11, %v2380_v19  ;;  %v4698_v13 = vld [vmem:[#allocation2 + $0x38] sm:$0xff]   ;;  %v2802_v12 = vstv %s3596_s26 }
 0xd4a   :  { %v3979_v20 = vpack.c.bf16 %v2395_v17, %v2394_v15  ;;  %v4700_v17 = vld [vmem:[#allocation2 + $0x28] sm:$0xff]  }
 0xd4b   :  { %v2382_v21 = vpop.permute.xlu1 %2381  ;;  %v4682_v23 = vld [vmem:[#allocation2 + $0x18] sm:$0xff]  }
 0xd4c   :  { %4086 = vst [vmem:[#allocation2 + $0x8] sm:$0xff] %v3979_v20   ;;  %v2393_v25 = vmul.f32 %v5124_v11, %v2382_v21  ;;  %4462 = vmatprep.subr.bf16.mxu0 %v4682_v23 }
 0xd4d   :  { %4463 = vmatpush3.bf16.msra.mxu0 %v4682_v23 }
 0xd4e   :  { %v3974_v29 = vpack.c.bf16 %v2393_v25, %v2392_v24 }
 0xd4f   :  { %v4683_v30 = vld [vmem:[#allocation2 + $0x10] sm:$0xff]  }
 0xd50   :  { %3975 = vst [vmem:[#allocation2] sm:$0xff] %v3974_v29   ;;  %4464 = vmatprep.subr.bf16.mxu0 %v4683_v30  ;;  %v4701_v29 = vld [vmem:[#allocation2 + $0x20] sm:$0xff]  }
 0xd51   :  { %4465 = vmatpush3.bf16.msra.mxu0 %v4683_v30 }
 0xd53   :  { %v4684_v31 = vld [vmem:[#allocation2 + $0x8] sm:$0xff]  }
 0xd54   :  { %4466 = vmatprep.subr.bf16.mxu0 %v4684_v31 }
 0xd55   :  { %4467 = vmatpush3.bf16.msra.mxu0 %v4684_v31 }
 0xd57   :  { %v4685_v32 = vld [vmem:[#allocation2] sm:$0xff]  }
 0xd58   :  { %4468 = vmatprep.subr.bf16.mxu0 %v4685_v32 }
 0xd59   :  { %4469 = vmatpush3.bf16.msra.mxu0 %v4685_v32 }
 0xd5a   :  { %4494 = vmatprep.subr.bf16.mxu0 %v4698_v13 }
 0xd5c   :  { %4471 = vmatmul.mubr.bf16.vlgmr.msra.gmra.mxu0 %v4687_v33 }
 0xd5d   :  { %4495 = vmatpush3.bf16.msra.mxu0 %v4698_v13 }
 0xe1c   :  { %v4472_v22 = vpop.f32.mrf.mxu0 }
 0xe1d   :  { %vm2584_vm9 = vcmp.gt.f32.partialorder %v4472_v22, 0.0  ;;  %v2589_v38 = vmul.f32 %v4472_v22, %v2586_v63 }
 0xe1e   :  { %v2567_v39 = vpop.f32.mrf.mxu0 }
 0xe1f   :  { %v2587_v41 = vmul.f32 %v2586_v63, %v2567_v39  ;;  %v2593_v42 = vsel %vm2584_vm9, %v4472_v22, %v2589_v38  ;;  %vm2582_vm10 = vcmp.gt.f32.partialorder %v2567_v39, 0.0 }
 0xe20   :  { %2636 = vrot.lane.b32.xlu0 %v2593_v42, %s4843_s24  ;;  %v4473_v1 = vpop.f32.mrf.mxu0 }
 0xe21   :  { %vm2585_vm11 = vcmp.gt.f32.partialorder %v4473_v1, 0.0  ;;  %v2590_v26 = vmul.f32 %v4473_v1, %v2586_v63  ;;  %v2591_v47 = vsel %vm2582_vm10, %v2567_v39, %v2587_v41 }
 0xe22   :  { %v2570_v43 = vpop.f32.mrf.mxu0 }
 0xe23   :  { %v2588_v44 = vmul.f32 %v2586_v63, %v2570_v43  ;;  %v2594_v45 = vsel %vm2585_vm11, %v4473_v1, %v2590_v26  ;;  %vm2583_vm12 = vcmp.gt.f32.partialorder %v2570_v43, 0.0 }
 0xe24   :  { %2632 = vrot.lane.b32.xlu0 %v2591_v47, %s4843_s24  ;;  %2638 = vrot.lane.b32.xlu1 %v2594_v45, %s4843_s24 }
 0xe25   :  { %v2592_v46 = vsel %vm2583_vm12, %v2570_v43, %v2588_v44  ;;  %v5180_v44 = vld [vmem:[#allocation10 + $0x10] ss:$0 sm:$0xff] }
 0xe28   :  { %2599 = vrot.lane.b32.xlu0 %v2593_v42, %s4833_s7  ;;  %2634 = vrot.lane.b32.xlu1 %v2592_v46, %s4843_s24 }
 0xe2c   :  { %2595 = vrot.lane.b32.xlu0 %v2591_v47, %s4833_s7  ;;  %2601 = vrot.lane.b32.xlu1 %v2594_v45, %s4833_s7 }
 0xe30   :  { %2597 = vrot.lane.b32.xlu1 %v2592_v46, %s4833_s7 }
 0xe92   :  { %v2637_v49 = vpop.permute.xlu0 %2636 }
 0xe93   :  { %v2647_v52 = vmul.f32 %v5118_v18, %v2637_v49 }
 0xe96   :  { %v2633_v50 = vpop.permute.xlu0 %2632  ;;  %v2639_v51 = vpop.permute.xlu1 %2638 }
 0xe97   :  { %v2648_v53 = vmul.f32 %v5118_v18, %v2639_v51  ;;  %v2645_v59 = vmul.f32 %v5118_v18, %v2633_v50 }
 0xe99   :  { %v4009_v54 = vpack.c.bf16 %v2648_v53, %v2647_v52 }
 0xe9a   :  { %v2600_v57 = vpop.permute.xlu0 %2599  ;;  %v2635_v58 = vpop.permute.xlu1 %2634 }
 0xe9b   :  { %4091 = vst [vmem:[#allocation2 + $0x18] sm:$0xff] %v4009_v54   ;;  %v2646_v60 = vmul.f32 %v5118_v18, %v2635_v58  ;;  %v2610_v35 = vmul.f32 %v5124_v11, %v2600_v57 }
 0xe9d   :  { %v4004_v61 = vpack.c.bf16 %v2646_v60, %v2645_v59 }
 0xe9e   :  { %v2602_v62 = vpop.permute.xlu1 %2601  ;;  %v2596_v56 = vpop.permute.xlu0 %2595 }
 0xe9f   :  { %4090 = vst [vmem:[#allocation2 + $0x10] sm:$0xff] %v4004_v61   ;;  %v2611_v9 = vmul.f32 %v5124_v11, %v2602_v62  ;;  %v2608_v5 = vmul.f32 %v5124_v11, %v2596_v56  ;;  %v4707_v61 = vld [vmem:[#allocation8 + $0xd8] sm:$0xff]   ;;  %v4708_v62 = vld [vmem:[#allocation2 + $0x38] sm:$0xff]   ;;  %v4711_v56 = vld [vmem:[#allocation2 + $0x30] sm:$0xff]  }
 0xea1   :  { %v3999_v2 = vpack.c.bf16 %v2611_v9, %v2610_v35  ;;  %v4709_v35 = vld [vmem:[#allocation2 + $0x38] sm:$0xff]   ;;  %v4710_v9 = vld [vmem:[#allocation2 + $0x30] sm:$0xff]  }
 0xea2   :  { %v2598_v3 = vpop.permute.xlu1 %2597  ;;  %v4692_v4 = vld [vmem:[#allocation2 + $0x18] sm:$0xff]  }
 0xea3   :  { %4089 = vst [vmem:[#allocation2 + $0x8] sm:$0xff] %v3999_v2   ;;  %v2609_v6 = vmul.f32 %v5124_v11, %v2598_v3  ;;  %4482 = vmatprep.subr.bf16.mxu1 %v4692_v4  ;;  %v4699_v11 = vld [vmem:[#allocation2 + $0x30] sm:$0xff]   ;;  %v3024_v2 = vstv %s3637_s29  ;;  %v4712_v3 = vld [vmem:[#allocation2 + $0x28] sm:$0xff]  }
 0xea4   :  { %4483 = vmatpush3.bf16.msra.mxu1 %v4692_v4  ;;  %4496 = vmatprep.subr.bf16.mxu0 %v4699_v11  ;;  %v4713_v4 = vld [vmem:[#allocation2 + $0x28] sm:$0xff]  }
 0xea5   :  { %v3994_v7 = vpack.c.bf16 %v2609_v6, %v2608_v5  ;;  %4497 = vmatpush3.bf16.msra.mxu0 %v4699_v11 }
 0xea6   :  { %v4693_v18 = vld [vmem:[#allocation2 + $0x10] sm:$0xff]   ;;  %4498 = vmatprep.subr.bf16.mxu0 %v4700_v17 }
 0xea7   :  { %3995 = vst [vmem:[#allocation2] sm:$0xff] %v3994_v7   ;;  %4484 = vmatprep.subr.bf16.mxu1 %v4693_v18 }
 0xea8   :  { %4485 = vmatpush3.bf16.msra.mxu1 %v4693_v18  ;;  %v4714_v18 = vld [vmem:[#allocation2 + $0x20] sm:$0xff]  }
 0xea9   :  { %4499 = vmatpush3.bf16.msra.mxu0 %v4700_v17 }
 0xeaa   :  { %v4694_v37 = vld [vmem:[#allocation2 + $0x8] sm:$0xff]   ;;  %4500 = vmatprep.subr.bf16.mxu0 %v4701_v29 }
 0xeab   :  { %4486 = vmatprep.subr.bf16.mxu1 %v4694_v37 }
 0xeac   :  { %4487 = vmatpush3.bf16.msra.mxu1 %v4694_v37  ;;  %v4715_v37 = vld [vmem:[#allocation2 + $0x20] sm:$0xff]  }
 0xead   :  { %4501 = vmatpush3.bf16.msra.mxu0 %v4701_v29 }
 0xeae   :  { %v4695_v8 = vld [vmem:[#allocation2] sm:$0xff]  }
 0xeaf   :  { %4488 = vmatprep.subr.bf16.mxu1 %v4695_v8 }
 0xeb0   :  { %4489 = vmatpush3.bf16.msra.mxu1 %v4695_v8 }
 0xeb1   :  { %4514 = vmatprep.subr.bf16.mxu1 %v4708_v62 }
 0xeb3   :  { %4491 = vmatmul.mubr.bf16.vlgmr.msra.gmra.mxu1 %v4697_v10 }
 0xeb4   :  { %4515 = vmatpush3.bf16.msra.mxu1 %v4708_v62 }
 0xeb5   :  { %4516 = vmatprep.subr.bf16.mxu1 %v4710_v9 }
 0xeb8   :  { %4517 = vmatpush3.bf16.msra.mxu1 %v4710_v9 }
 0xeb9   :  { %4518 = vmatprep.subr.bf16.mxu1 %v4712_v3 }
 0xebc   :  { %4519 = vmatpush3.bf16.msra.mxu1 %v4712_v3 }
 0xebd   :  { %4520 = vmatprep.subr.bf16.mxu1 %v4714_v18 }
 0xec0   :  { %4521 = vmatpush3.bf16.msra.mxu1 %v4714_v18 }
 0xf73   :  { %v4492_v15 = vpop.f32.mrf.mxu1 }
 0xf74   :  { %vm2800_vm13 = vcmp.gt.f32.partialorder %v4492_v15, 0.0  ;;  %v2805_v19 = vmul.f32 %v4492_v15, %v2802_v12 }
 0xf75   :  { %v2783_v20 = vpop.f32.mrf.mxu1 }
 0xf76   :  { %v2809_v21 = vsel %vm2800_vm13, %v4492_v15, %v2805_v19  ;;  %vm2798_vm14 = vcmp.gt.f32.partialorder %v2783_v20, 0.0  ;;  %v2803_v23 = vmul.f32 %v2802_v12, %v2783_v20 }
 0xf77   :  { %v4493_v24 = vpop.f32.mrf.mxu1  ;;  %v5147_v25 = vadd.f32 %v2809_v21, %v5091_v55  ;;  %v4722_v21 = vld [vmem:[#allocation8 + $0xe0] sm:$0xff]  }
 0xf78   :  { %v2807_v30 = vsel %vm2798_vm14, %v2783_v20, %v2803_v23  ;;  %vm2801_vm15 = vcmp.gt.f32.partialorder %v4493_v24, 0.0  ;;  %v2806_v31 = vmul.f32 %v4493_v24, %v2802_v12  ;;  %4530 = vmatprep.mubr.bf16.mxu1 %v4722_v21 }
 0xf79   :  { %2858 = vrot.lane.b32.xlu0 %v5147_v25, %s4844_s27  ;;  %v2786_v32 = vpop.f32.mrf.mxu1  ;;  %v5152_v14 = vadd.f32 %v2807_v30, %v5096_v0  ;;  %v4706_v0 = vld [vmem:[#allocation8 + $0xd0] sm:$0xff]  }
 0xf7a   :  { %v2810_v33 = vsel %vm2801_vm15, %v4493_v24, %v2806_v31  ;;  %vm2799_vm0 = vcmp.gt.f32.partialorder %v2786_v32, 0.0  ;;  %v2804_v34 = vmul.f32 %v2802_v12, %v2786_v32  ;;  %4510 = vmatprep.mubr.bf16.mxu0 %v4706_v0 }
 0xf7b   :  { %v5155_v55 = vadd.f32 %v2810_v33, %v5099_v27 }
 0xf7c   :  { %v2808_v63 = vsel %vm2799_vm0, %v2786_v32, %v2804_v34 }
 0xf7d   :  { %2854 = vrot.lane.b32.xlu0 %v5152_v14, %s4844_s27  ;;  %2860 = vrot.lane.b32.xlu1 %v5155_v55, %s4844_s27  ;;  %v5162_v28 = vadd.f32 %v2808_v63, %v5106_v36  ;;  %v5174_v36 = vld [vmem:[#allocation10 + $0x11] ss:$0 sm:$0xff] }
 0xf81   :  { %2821 = vrot.lane.b32.xlu0 %v5147_v25, %s4845_s28  ;;  %2856 = vrot.lane.b32.xlu1 %v5162_v28, %s4844_s27 }
 0xf85   :  { %2817 = vrot.lane.b32.xlu0 %v5152_v14, %s4845_s28  ;;  %2823 = vrot.lane.b32.xlu1 %v5155_v55, %s4845_s28 }
 0xf89   :  { %2819 = vrot.lane.b32.xlu1 %v5162_v28, %s4845_s28 }
 0xfeb   :  { %v2859_v27 = vpop.permute.xlu0 %2858 }
 0xfec   :  { %v2869_v39 = vmul.f32 %v5174_v36, %v2859_v27 }
 0xfef   :  { %v2855_v22 = vpop.permute.xlu0 %2854  ;;  %v2861_v38 = vpop.permute.xlu1 %2860 }
 0xff0   :  { %v2870_v40 = vmul.f32 %v5174_v36, %v2861_v38  ;;  %v2867_v26 = vmul.f32 %v5174_v36, %v2855_v22 }
 0xff2   :  { %v4029_v41 = vpack.c.bf16 %v2870_v40, %v2869_v39 }
 0xff3   :  { %v2822_v42 = vpop.permute.xlu0 %2821  ;;  %v2857_v1 = vpop.permute.xlu1 %2856 }
 0xff4   :  { %4094 = vst [vmem:[#allocation2 + $0x18] sm:$0xff] %v4029_v41   ;;  %v2868_v43 = vmul.f32 %v5174_v36, %v2857_v1  ;;  %v2832_v46 = vmul.f32 %v5180_v44, %v2822_v42 }
 0xff6   :  { %v4024_v47 = vpack.c.bf16 %v2868_v43, %v2867_v26 }
 0xff7   :  { %v2824_v45 = vpop.permute.xlu1 %2823  ;;  %v2818_v49 = vpop.permute.xlu0 %2817 }
 0xff8   :  { %4093 = vst [vmem:[#allocation2 + $0x10] sm:$0xff] %v4024_v47   ;;  %v2833_v48 = vmul.f32 %v5180_v44, %v2824_v45  ;;  %v2830_v53 = vmul.f32 %v5180_v44, %v2818_v49 }
 0xffa   :  { %v4019_v50 = vpack.c.bf16 %v2833_v48, %v2832_v46 }
 0xffb   :  { %v2820_v51 = vpop.permute.xlu1 %2819  ;;  %v4702_v52 = vld [vmem:[#allocation2 + $0x18] sm:$0xff]  }
 0xffc   :  { %4092 = vst [vmem:[#allocation2 + $0x8] sm:$0xff] %v4019_v50   ;;  %v2831_v54 = vmul.f32 %v5180_v44, %v2820_v51  ;;  %4502 = vmatprep.subr.bf16.mxu0 %v4702_v52  ;;  %v3240_v50 = vstv %s3638_s2 }
 0xffd   :  { %4503 = vmatpush3.bf16.msra.mxu0 %v4702_v52 }
 0xffe   :  { %v4014_v57 = vpack.c.bf16 %v2831_v54, %v2830_v53 }
 0xfff   :  { %v4703_v58 = vld [vmem:[#allocation2 + $0x10] sm:$0xff]  }
0x1000   :  { %4015 = vst [vmem:[#allocation2] sm:$0xff] %v4014_v57   ;;  %4504 = vmatprep.subr.bf16.mxu0 %v4703_v58 }
0x1001   :  { %4505 = vmatpush3.bf16.msra.mxu0 %v4703_v58 }
0x1003   :  { %v4704_v59 = vld [vmem:[#allocation2 + $0x8] sm:$0xff]  }
0x1004   :  { %4506 = vmatprep.subr.bf16.mxu0 %v4704_v59 }
0x1005   :  { %4507 = vmatpush3.bf16.msra.mxu0 %v4704_v59 }
0x1007   :  { %v4705_v60 = vld [vmem:[#allocation2] sm:$0xff]  }
0x1008   :  { %4508 = vmatprep.subr.bf16.mxu0 %v4705_v60 }
0x1009   :  { %4509 = vmatpush3.bf16.msra.mxu0 %v4705_v60 }
0x100a   :  { %4534 = vmatprep.subr.bf16.mxu0 %v4837_v16 }
0x100c   :  { %4511 = vmatmul.mubr.bf16.vlgmr.msra.gmra.mxu0 %v4707_v61 }
0x100d   :  { %4535 = vmatpush3.bf16.msra.mxu0 %v4709_v35  ;;  %4550 = vmatprep.mubr.msk.bf16.mxu0 %vm4846_vm5, %v4837_v16 }
0x100e   :  { %4536 = vmatprep.subr.bf16.mxu0 %v4837_v16 }
0x1011   :  { %4537 = vmatpush3.bf16.msra.mxu0 %v4711_v56 }
0x1012   :  { %4538 = vmatprep.subr.bf16.mxu0 %v4837_v16 }
0x1015   :  { %4539 = vmatpush3.bf16.msra.mxu0 %v4713_v4 }
0x1016   :  { %4540 = vmatprep.subr.bf16.mxu0 %v4837_v16 }
0x1019   :  { %4541 = vmatpush3.bf16.msra.mxu0 %v4715_v37  ;;  %v3273_v37 = vld [vmem:[#allocation8 + $0xf0] sm:$0xf] }
0x101a   :  { %4542 = vmatprep.subr.bf16.mxu0 %v4837_v16 }
0x10cc   :  { %v4512_v5 = vpop.f32.mrf.mxu0 }
0x10cd   :  { %vm3022_vm1 = vcmp.gt.f32.partialorder %v4512_v5, 0.0  ;;  %v3027_v6 = vmul.f32 %v4512_v5, %v3024_v2 }
0x10ce   :  { %v3005_v7 = vpop.f32.mrf.mxu0 }
0x10cf   :  { %v3025_v8 = vmul.f32 %v3024_v2, %v3005_v7  ;;  %v3031_v10 = vsel %vm3022_vm1, %v4512_v5, %v3027_v6  ;;  %vm3020_vm2 = vcmp.gt.f32.partialorder %v3005_v7, 0.0 }
0x10d0   :  { %3074 = vrot.lane.b32.xlu0 %v3031_v10, %s4844_s27  ;;  %v4513_v13 = vpop.f32.mrf.mxu0 }
0x10d1   :  { %vm3023_vm3 = vcmp.gt.f32.partialorder %v4513_v13, 0.0  ;;  %v3028_v11 = vmul.f32 %v4513_v13, %v3024_v2  ;;  %v3029_v17 = vsel %vm3020_vm2, %v3005_v7, %v3025_v8 }
0x10d2   :  { %v3008_v12 = vpop.f32.mrf.mxu0 }
0x10d3   :  { %v3026_v15 = vmul.f32 %v3024_v2, %v3008_v12  ;;  %v3032_v19 = vsel %vm3023_vm3, %v4513_v13, %v3028_v11  ;;  %vm3021_vm4 = vcmp.gt.f32.partialorder %v3008_v12, 0.0 }
0x10d4   :  { %3070 = vrot.lane.b32.xlu0 %v3029_v17, %s4844_s27  ;;  %3076 = vrot.lane.b32.xlu1 %v3032_v19, %s4844_s27 }
0x10d5   :  { %v3030_v20 = vsel %vm3021_vm4, %v3008_v12, %v3026_v15 }
0x10d8   :  { %3037 = vrot.lane.b32.xlu0 %v3031_v10, %s4845_s28  ;;  %3072 = vrot.lane.b32.xlu1 %v3030_v20, %s4844_s27 }
0x10dc   :  { %3033 = vrot.lane.b32.xlu0 %v3029_v17, %s4845_s28  ;;  %3039 = vrot.lane.b32.xlu1 %v3032_v19, %s4845_s28 }
0x10e0   :  { %3035 = vrot.lane.b32.xlu1 %v3030_v20, %s4845_s28 }
0x1142   :  { %v3075_v23 = vpop.permute.xlu0 %3074 }
0x1143   :  { %v3085_v30 = vmul.f32 %v5174_v36, %v3075_v23 }
0x1146   :  { %v3071_v24 = vpop.permute.xlu0 %3070  ;;  %v3077_v29 = vpop.permute.xlu1 %3076 }
0x1147   :  { %v3086_v31 = vmul.f32 %v5174_v36, %v3077_v29  ;;  %v3083_v63 = vmul.f32 %v5174_v36, %v3071_v24 }
0x1149   :  { %v4049_v32 = vpack.c.bf16 %v3086_v31, %v3085_v30 }
0x114a   :  { %v3038_v33 = vpop.permute.xlu0 %3037  ;;  %v3073_v34 = vpop.permute.xlu1 %3072 }
0x114b   :  { %4097 = vst [vmem:[#allocation2 + $0x18] sm:$0xff] %v4049_v32   ;;  %v3084_v0 = vmul.f32 %v5174_v36, %v3073_v34  ;;  %v3048_v38 = vmul.f32 %v5180_v44, %v3038_v33 }
0x114d   :  { %v4044_v27 = vpack.c.bf16 %v3084_v0, %v3083_v63 }
0x114e   :  { %v3040_v22 = vpop.permute.xlu1 %3039  ;;  %v3034_v40 = vpop.permute.xlu0 %3033 }
0x114f   :  { %4096 = vst [vmem:[#allocation2 + $0x10] sm:$0xff] %v4044_v27   ;;  %v3049_v39 = vmul.f32 %v5180_v44, %v3040_v22  ;;  %v3046_v26 = vmul.f32 %v5180_v44, %v3034_v40 }
0x1151   :  { %v4039_v41 = vpack.c.bf16 %v3049_v39, %v3048_v38 }
0x1152   :  { %v3036_v42 = vpop.permute.xlu1 %3035  ;;  %v4716_v1 = vld [vmem:[#allocation2 + $0x18] sm:$0xff]  }
0x1153   :  { %4095 = vst [vmem:[#allocation2 + $0x8] sm:$0xff] %v4039_v41   ;;  %v3047_v43 = vmul.f32 %v5180_v44, %v3036_v42  ;;  %v4717_v47 = vld [vmem:[#allocation2 + $0x18] sm:$0xff]   ;;  %4522 = vmatprep.subr.bf16.mxu1 %v4716_v1  ;;  %v4723_v44 = vld [vmem:[#allocation8 + $0xe8] sm:$0xff]  }
0x1154   :  { %4543 = vmatpush3.bf16.msra.mxu0 %v4717_v47  ;;  %4523 = vmatpush3.bf16.msra.mxu1 %v4716_v1 }
0x1155   :  { %v4034_v45 = vpack.c.bf16 %v3047_v43, %v3046_v26  ;;  %4544 = vmatprep.subr.bf16.mxu0 %v4837_v16 }
0x1156   :  { %v4718_v36 = vld [vmem:[#allocation2 + $0x10] sm:$0xff]  }
0x1157   :  { %4035 = vst [vmem:[#allocation2] sm:$0xff] %v4034_v45   ;;  %v4719_v46 = vld [vmem:[#allocation2 + $0x10] sm:$0xff]   ;;  %4524 = vmatprep.subr.bf16.mxu1 %v4718_v36 }
0x1158   :  { %4545 = vmatpush3.bf16.msra.mxu0 %v4719_v46  ;;  %4525 = vmatpush3.bf16.msra.mxu1 %v4718_v36 }
0x1159   :  { %4546 = vmatprep.subr.bf16.mxu0 %v4837_v16 }
0x115a   :  { %v4720_v48 = vld [vmem:[#allocation2 + $0x8] sm:$0xff]  }
0x115b   :  { %4526 = vmatprep.subr.bf16.mxu1 %v4720_v48 }
0x115c   :  { %4527 = vmatpush3.bf16.msra.mxu1 %v4720_v48 }
0x115e   :  { %v4721_v49 = vld [vmem:[#allocation2] sm:$0xff]  }
0x115f   :  { %4528 = vmatprep.subr.bf16.mxu1 %v4721_v49 }
0x1160   :  { %4529 = vmatpush3.bf16.msra.mxu1 %v4721_v49 }
0x1163   :  { %4531 = vmatmul.mubr.bf16.vlgmr.msra.gmra.mxu1 %v4723_v44 }
0x1223   :  { %v4532_v51 = vpop.f32.mrf.mxu1 }
0x1224   :  { %v3243_v52 = vmul.f32 %v4532_v51, %v3240_v50  ;;  %vm3238_vm6 = vcmp.gt.f32.partialorder %v4532_v51, 0.0 }
0x1225   :  { %v3221_v53 = vpop.f32.mrf.mxu1 }
0x1226   :  { %v3241_v54 = vmul.f32 %v3240_v50, %v3221_v53  ;;  %vm3236_vm7 = vcmp.gt.f32.partialorder %v3221_v53, 0.0  ;;  %v3247_v58 = vsel %vm3238_vm6, %v4532_v51, %v3243_v52 }
0x1227   :  { %v4533_v57 = vpop.f32.mrf.mxu1  ;;  %v3251_v9 = vadd.f32 %v3247_v58, %v5147_v25  ;;  %v3290_v25 = vld [vmem:[#allocation10] sm:$0xff] }
0x1228   :  { %vm3239_vm8 = vcmp.gt.f32.partialorder %v4533_v57, 0.0  ;;  %v3244_v59 = vmul.f32 %v4533_v57, %v3240_v50  ;;  %v3245_v61 = vsel %vm3236_vm7, %v3221_v53, %v3241_v54 }
0x1229   :  { %v3224_v60 = vpop.f32.mrf.mxu1  ;;  %v3249_v3 = vadd.f32 %v3245_v61, %v5152_v14 }
0x122a   :  { %v3248_v62 = vsel %vm3239_vm8, %v4533_v57, %v3244_v59  ;;  %vm3237_vm9 = vcmp.gt.f32.partialorder %v3224_v60, 0.0  ;;  %v3242_v35 = vmul.f32 %v3240_v50, %v3224_v60 }
0x122b   :  { %v3252_v56 = vadd.f32 %v3248_v62, %v5155_v55 }
0x122c   :  { %v3246_v2 = vsel %vm3237_vm9, %v3224_v60, %v3242_v35 }
0x122d   :  { %v4059_v4 = vpack.c.bf16 %v3252_v56, %v3251_v9  ;;  %v3250_v5 = vadd.f32 %v3246_v2, %v5162_v28 }
0x122f   :  { %4098 = vst [vmem:[#allocation2 + $0x8] sm:$0xff] %v4059_v4   ;;  %v4054_v6 = vpack.c.bf16 %v3250_v5, %v3249_v3 }
0x1231   :  { %4055 = vst [vmem:[#allocation2] sm:$0xff] %v4054_v6  }
0x1236   :  { %v4724_v7 = vld [vmem:[#allocation2 + $0x8] sm:$0xff]  }
0x1237   :  { %4547 = vmatpush3.bf16.msra.mxu0 %v4724_v7 }
0x1238   :  { %4548 = vmatprep.subr.bf16.mxu0 %v4837_v16  ;;  %v4725_v18 = vld [vmem:[#allocation2] sm:$0xff]  }
0x123b   :  { %4549 = vmatpush3.bf16.msra.mxu0 %v4725_v18 }
0x123e   :  { %4551 = vmatmul.mubr.bf16.vlgmr.msra.gmra.mxu0 %v3273_v37 }
0x12fe   :  { %v3373_v55 = vpop.f32.mrf.mxu0 }
0x12ff   :  { %v3374_v8 = vadd.f32 %v3373_v55, %v3290_v25 }
0x1300   :  { %v4552_v14 = vpop.f32.mrf.mxu0 }
0x1301   :  { %3379 = vst [vmem:[#allocation11] sm:$0xff] %v3374_v8 }
0x1302   :  { %v3376_v28 = vpop.f32.mrf.mxu0 }
0x1303   :  { %4809 = shalt.err (!%p4806_p10)
}
0x1304   :  { %3389 = dma.vmem_to_hbm [thread:$0]  %s3387_s30, 128, %s5222_s4, [#allocation5]   ;;  %v4553_v16 = vpop.f32.mrf.mxu0 }
0x1305   :  { %4824 = dma.done.wait [#allocation5], 128  }
0x1306   :  { %4825 = vsyncadd [#allocation5], 4294967168 }
0x1307   :  { %3393 = vsyncpa [#allocation4], 1 }
0x1308   :  { %3394 = vsyncpa [#allocation9], 1 }
0x1309   :  { %3395 = vsyncpa [#allocation5], 1 }
0x130a   :  { %3396 = vsyncpa [#allocation6], 1 }

</bundles_post_ra>
